<compile_context>
chip_gen: v6e
topology: v6e:2x2x1
jax: 0.10.0
libtpu: 0.0.40
codegen_flags: <defaults>
</compile_context>

<pallas_src>
import functools
import math

import jax
import jax.numpy as jnp
from jax.experimental import pallas as pl
from jax.experimental.pallas import tpu as pltpu

PARAM_ORDER = ("g1", "be1", "wq", "bq", "wkv", "bkv", "wo", "bo",
               "g2", "be2", "w1", "b1", "w2", "b2")

LN_EPS = 1e-5          # torch.nn.LayerNorm default
NEG_INF = -1e30        # finite "masked" fill -> no NaN for fully-masked query rows
DECREASE_LIST = (2, 4)


# ----------------------------- in-kernel math helpers -----------------------------
def _erf_approx(x):
    # Abramowitz & Stegun 7.1.26 rational erf approximation (max abs err ~1.5e-7),
    # reproducing exact nn.GELU() with ops that lower cleanly in Mosaic.
    a1, a2, a3, a4, a5 = 0.254829592, -0.284496736, 1.421413741, -1.453152027, 1.061405429
    p = 0.3275911
    s = jnp.where(x >= 0, 1.0, -1.0)
    ax = jnp.abs(x)
    t = pl.reciprocal(1.0 + p * ax, approx=True)     # divide goes to the EUP slot
    poly = ((((a5 * t + a4) * t + a3) * t + a2) * t + a1) * t
    return s * (1.0 - poly * jnp.exp(-ax * ax))


def _gelu_exact(x):
    return 0.5 * x * (1.0 + _erf_approx(x * 0.7071067811865476))


def _layer_norm(v, g, b):
    mu = jnp.mean(v, axis=-1, keepdims=True)
    var = jnp.mean(jnp.square(v - mu), axis=-1, keepdims=True)
    return (v - mu) * jax.lax.rsqrt(var + LN_EPS) * g + b


# ----------------------------- fused EncoderLayer body -----------------------------
def _encoder_layer_body(q, kv, klen,
                        g1_ref, be1_ref, wq_ref, bq_ref, wkv_ref, bkv_ref,
                        wo_ref, bo_ref, g2_ref, be2_ref, w1_ref, b1_ref, w2_ref, b2_ref,
                        out_ref, ctx_ref, *, num_heads, head_size):
    tq, D = q.shape
    Tk = kv.shape[0]
    scale = 1.0 / math.sqrt(head_size)

    # ---- norm1 + fused full-width Q / KV projections (bf16 on MXU, f32 accumulation) ----
    xn = _layer_norm(q, g1_ref[...], be1_ref[...])
    qp = (jnp.dot(xn.astype(jnp.bfloat16), wq_ref[...],
                  preferred_element_type=jnp.float32) + bq_ref[...]) * scale
    kvp = jnp.dot(kv.astype(jnp.bfloat16), wkv_ref[...],
                  preferred_element_type=jnp.float32) + bkv_ref[...]
    kp = kvp[:, :D]
    vp = kvp[:, D:]

    # key-padding mask built in-kernel from the prefetched scalar length
    valid = jax.lax.broadcasted_iota(jnp.int32, (tq, Tk), 1) < klen

    # ---- per-head attention; each head's context lands in its lane slice of ctx_ref ----
    # TODO(synk): flash-style Tk tiling (online softmax) for very long sequences.
    for h in range(num_heads):
        sl = slice(h * head_size, (h + 1) * head_size)
        qh = qp[:, sl].astype(jnp.bfloat16)
        kh = kp[:, sl].astype(jnp.bfloat16)
        vh = vp[:, sl].astype(jnp.bfloat16)
        s = jax.lax.dot_general(qh, kh, (((1,), (1,)), ((), ())),
                                preferred_element_type=jnp.float32)
        s = jnp.where(valid, s, NEG_INF)
        m = jnp.max(s, axis=-1, keepdims=True)
        p = jnp.exp(s - m)
        l = jnp.sum(p, axis=-1, keepdims=True)
        ctx = jnp.dot(p.astype(jnp.bfloat16), vh, preferred_element_type=jnp.float32)
        ctx_ref[:, sl] = ctx * pl.reciprocal(l, approx=True)

    # single full-width output projection
    attn = jnp.dot(ctx_ref[...].astype(jnp.bfloat16), wo_ref[...],
                   preferred_element_type=jnp.float32) + bo_ref[...]
    x1 = q + attn            # residual; dropout p=0.0 is identity

    # ---- norm2 + GELU MLP ----
    x2n = _layer_norm(x1, g2_ref[...], be2_ref[...])
    hid = jnp.dot(x2n.astype(jnp.bfloat16), w1_ref[...],
                  preferred_element_type=jnp.float32) + b1_ref[...]
    hid = _gelu_exact(hid)
    ff = jnp.dot(hid.astype(jnp.bfloat16), w2_ref[...],
                 preferred_element_type=jnp.float32) + b2_ref[...]
    out_ref[0] = (x1 + ff).astype(out_ref.dtype)


def _self_attn_kernel(len_ref, x_ref,
                      g1, be1, wq, bq, wkv, bkv, wo, bo, g2, be2, w1, b1, w2, b2,
                      out_ref, ctx_ref, *, tq, num_heads, head_size):
    # Self-attention layer: the activation is passed ONCE; the q tile is sliced out of
    # the full-sequence KV block in-kernel.
    klen = len_ref[pl.program_id(0)]
    kv = x_ref[0]                                   # (Tk, D)
    if tq == kv.shape[0]:
        q = kv
    else:
        start = pl.multiple_of(pl.program_id(1) * tq, tq)
        q = x_ref[0, pl.ds(start, tq), :]           # (tq, D)
    _encoder_layer_body(q, kv, klen, g1, be1, wq, bq, wkv, bkv, wo, bo,
                        g2, be2, w1, b1, w2, b2, out_ref, ctx_ref,
                        num_heads=num_heads, head_size=head_size)


def _cross_attn_kernel(len_ref, q_ref, kv_ref,
                       g1, be1, wq, bq, wkv, bkv, wo, bo, g2, be2, w1, b1, w2, b2,
                       out_ref, ctx_ref, *, num_heads, head_size):
    # Downsampling layers: q = x[:, 1::2, :], kv = x (different tensors).
    klen = len_ref[pl.program_id(0)]
    _encoder_layer_body(q_ref[0], kv_ref[0], klen, g1, be1, wq, bq, wkv, bkv, wo, bo,
                        g2, be2, w1, b1, w2, b2, out_ref, ctx_ref,
                        num_heads=num_heads, head_size=head_size)


# ----------------------------- pallas_call wrappers -----------------------------
def _choose_q_tile(Tq, target):
    if Tq <= target:
        return Tq
    t = max(8, (target // 8) * 8)
    while t >= 8:
        if Tq % t == 0:
            return t
        t -= 8
    return Tq


def _full_spec(arr):
    nd = arr.ndim
    return pl.BlockSpec(arr.shape, lambda b, qi, lens, _nd=nd: (0,) * _nd)


def _compiler_params():
    return pltpu.CompilerParams(
        dimension_semantics=("parallel", "parallel"),
        vmem_limit_bytes=48 * 1024 * 1024)


def encoder_layer_self(x, lengths, p, num_heads, head_size, q_block):
    B, T, D = x.shape
    tq = _choose_q_tile(T, q_block)
    nq = T // tq
    param_list = [p[name] for name in PARAM_ORDER]
    kernel = functools.partial(_self_attn_kernel, tq=tq,
                               num_heads=num_heads, head_size=head_size)
    return pl.pallas_call(
        kernel,
        out_shape=jax.ShapeDtypeStruct((B, T, D), jnp.float32),
        grid_spec=pltpu.PrefetchScalarGridSpec(
            num_scalar_prefetch=1,
            grid=(B, nq),
            in_specs=[pl.BlockSpec((1, T, D), lambda b, qi, lens: (b, 0, 0))]
                     + [_full_spec(w) for w in param_list],
            out_specs=pl.BlockSpec((1, tq, D), lambda b, qi, lens: (b, qi, 0)),
            scratch_shapes=[pltpu.VMEM((tq, D), jnp.float32)]),
        compiler_params=_compiler_params(),
    )(lengths, x, *param_list)


def encoder_layer_cross(q, kv, lengths, p, num_heads, head_size, q_block):
    B, Tq, D = q.shape
    Tk = kv.shape[1]
    tq = _choose_q_tile(Tq, q_block)
    nq = Tq // tq
    param_list = [p[name] for name in PARAM_ORDER]
    kernel = functools.partial(_cross_attn_kernel,
                               num_heads=num_heads, head_size=head_size)
    return pl.pallas_call(
        kernel,
        out_shape=jax.ShapeDtypeStruct((B, Tq, D), jnp.float32),
        grid_spec=pltpu.PrefetchScalarGridSpec(
            num_scalar_prefetch=1,
            grid=(B, nq),
            in_specs=[pl.BlockSpec((1, tq, D), lambda b, qi, lens: (b, qi, 0)),
                      pl.BlockSpec((1, Tk, D), lambda b, qi, lens: (b, 0, 0))]
                     + [_full_spec(w) for w in param_list],
            out_specs=pl.BlockSpec((1, tq, D), lambda b, qi, lens: (b, qi, 0)),
            scratch_shapes=[pltpu.VMEM((tq, D), jnp.float32)]),
        compiler_params=_compiler_params(),
    )(lengths, q, kv, *param_list)


def unet_encoder_forward(x, mask, params, num_heads, return_inter=False, q_block=128):
    """x: [B, T, D]; mask: bool [B, 1, 1, T] key-padding mask (contiguous valid prefix)."""
    head_size = x.shape[-1] // num_heads
    # TODO(synk): arbitrary (non-prefix / per-head) masks would need a dense-bias path.
    lengths = jnp.sum(mask[:, 0, 0, :].astype(jnp.int32), axis=-1)
    mid_states = []
    for i, p in enumerate(params):
        if i in DECREASE_LIST:
            # TODO(synk): fold the 1::2 downsample into the kernel with a stride-2 pl.ds
            #             read of the KV block to avoid the XLA strided-slice round trip.
            q = x[:, 1::2, :]
            x = encoder_layer_cross(q, x, lengths, p, num_heads, head_size, q_block)
            lengths = lengths // 2          # == mask[:, :, :, 1::2] for a prefix mask
        else:
            x = encoder_layer_self(x, lengths, p, num_heads, head_size, q_block)
        if return_inter:
            mid_states.append(x)
    if return_inter:
        return x, mid_states
    return x


# ----------------------- deterministic parameter init -----------------------
def init_unet_encoder_params(key, dim, depth, heads, mlp_dim):
    params = []
    for lk in jax.random.split(key, depth):
        ks = jax.random.split(lk, 6)

        def linear(k, fan_in, fan_out):
            bound = 1.0 / math.sqrt(fan_in)
            kw, kb = jax.random.split(k)
            w = jax.random.uniform(kw, (fan_in, fan_out), jnp.float32, -bound, bound)
            b = jax.random.uniform(kb, (1, fan_out), jnp.float32, -bound, bound)
            return w, b

        wq, bq = linear(ks[0], dim, dim)
        wk, bk = linear(ks[1], dim, dim)
        wv, bv = linear(ks[2], dim, dim)
        wo, bo = linear(ks[3], dim, dim)
        w1, b1 = linear(ks[4], dim, mlp_dim)
        w2, b2 = linear(ks[5], mlp_dim, dim)

        params.append(dict(
            g1=jnp.ones((1, dim), jnp.float32), be1=jnp.zeros((1, dim), jnp.float32),
            # lane-dense, bf16 weights (halves weight DMA / VMEM); biases & LN params f32
            wq=wq.astype(jnp.bfloat16), bq=bq,
            wkv=jnp.concatenate([wk, wv], axis=1).astype(jnp.bfloat16),
            bkv=jnp.concatenate([bk, bv], axis=1),
            wo=wo.astype(jnp.bfloat16), bo=bo,
            g2=jnp.ones((1, dim), jnp.float32), be2=jnp.zeros((1, dim), jnp.float32),
            w1=w1.astype(jnp.bfloat16), b1=b1,
            w2=w2.astype(jnp.bfloat16), b2=b2,
        ))
    return params


# ----------------------- pure-JAX reference for validation -----------------------
def _layer_norm_ref(v, g, b):
    mu = v.mean(-1, keepdims=True)
    var = ((v - mu) ** 2).mean(-1, keepdims=True)
    return (v - mu) / jnp.sqrt(var + LN_EPS) * g + b


def encoder_layer_ref(q, kv, lengths, p, num_heads, head_size):
    hp = jax.lax.Precision.HIGHEST
    B, Tq, D = q.shape
    Tk = kv.shape[1]
    H, hd = num_heads, head_size
    wq = p["wq"].astype(jnp.float32)
    wkv = p["wkv"].astype(jnp.float32)
    wo = p["wo"].astype(jnp.float32)
    w1 = p["w1"].astype(jnp.float32)
    w2 = p["w2"].astype(jnp.float32)

    x = q
    xn = _layer_norm_ref(x, p["g1"], p["be1"])
    qp = (jnp.einsum("btd,de->bte", xn, wq, precision=hp) + p["bq"]) / math.sqrt(hd)
    kvp = jnp.einsum("btd,de->bte", kv, wkv, precision=hp) + p["bkv"]
    kp, vp = kvp[..., :D], kvp[..., D:]

    qh = qp.reshape(B, Tq, H, hd).transpose(0, 2, 1, 3)
    kh = kp.reshape(B, Tk, H, hd).transpose(0, 2, 1, 3)
    vh = vp.reshape(B, Tk, H, hd).transpose(0, 2, 1, 3)
    s = jnp.einsum("bhqe,bhke->bhqk", qh, kh, precision=hp)
    valid = jnp.arange(Tk)[None, None, None, :] < lengths[:, None, None, None]
    s = jnp.where(valid, s, NEG_INF)
    w = jax.nn.softmax(s, axis=-1)
    ctx = jnp.einsum("bhqk,bhke->bhqe", w, vh, precision=hp)
    ctx = ctx.transpose(0, 2, 1, 3).reshape(B, Tq, D)
    x1 = x + jnp.einsum("bqd,de->bqe", ctx, wo, precision=hp) + p["bo"]

    x2 = _layer_norm_ref(x1, p["g2"], p["be2"])
    hid = jax.nn.gelu(jnp.einsum("bqd,dm->bqm", x2, w1, precision=hp) + p["b1"],
                      approximate=False)
    return x1 + jnp.einsum("bqm,md->bqd", hid, w2, precision=hp) + p["b2"]


def unet_encoder_ref(x, mask, params, num_heads):
    head_size = x.shape[-1] // num_heads
    lengths = jnp.sum(mask[:, 0, 0, :].astype(jnp.int32), axis=-1)
    for i, p in enumerate(params):
        if i in DECREASE_LIST:
            q = x[:, 1::2, :]
            x = encoder_layer_ref(q, x, lengths, p, num_heads, head_size)
            lengths = lengths // 2
        else:
            x = encoder_layer_ref(x, x, lengths, p, num_heads, head_size)
    return x


if __name__ == "__main__":
    B, T, dim, heads, mlp_dim, depth = 2, 16, 32, 4, 64, 5  # depth=5 exercises both decrease layers

    key = jax.random.PRNGKey(0)
    kx, kp = jax.random.split(key)
    x = jax.random.normal(kx, (B, T, dim), jnp.float32)

    # padding mask: batch 0 fully valid, batch 1 has 12 valid tokens
    lengths = jnp.array([T, 12])
    mask = (jnp.arange(T)[None, :] < lengths[:, None])[:, None, None, :]  # bool [B,1,1,T]

    params = init_unet_encoder_params(kp, dim, depth, heads, mlp_dim)

    # q_block=8 exercises the multi-q-tile grid path at this tiny sequence length
    out = unet_encoder_forward(x, mask, params, heads, q_block=8)
    out = jax.block_until_ready(out)

    assert out.shape == (B, T // 4, dim), out.shape
    ref = unet_encoder_ref(x, mask, params, heads)
    max_err = float(jnp.max(jnp.abs(out - ref)))
    # kernel uses bf16 MXU operands + EUP approx reciprocals; reference is f32-exact
    assert max_err < 1.5e-1, f"kernel/reference mismatch: max abs err = {max_err}"

    print("KERNEL_OK")
</pallas_src>

<mosaic_0001>
module attributes {stable_mosaic.version = 11 : i64} {
  func.func @_self_attn_kernel(%arg0: i32, %arg1: i32, %arg2: memref<2xi32, #tpu.memory_space<smem>>, %arg3: memref<1x16x32xf32, #tpu.memory_space<vmem>>, %arg4: memref<1x32xf32, #tpu.memory_space<vmem>>, %arg5: memref<1x32xf32, #tpu.memory_space<vmem>>, %arg6: memref<32x32xbf16, #tpu.memory_space<vmem>>, %arg7: memref<1x32xf32, #tpu.memory_space<vmem>>, %arg8: memref<32x64xbf16, #tpu.memory_space<vmem>>, %arg9: memref<1x64xf32, #tpu.memory_space<vmem>>, %arg10: memref<32x32xbf16, #tpu.memory_space<vmem>>, %arg11: memref<1x32xf32, #tpu.memory_space<vmem>>, %arg12: memref<1x32xf32, #tpu.memory_space<vmem>>, %arg13: memref<1x32xf32, #tpu.memory_space<vmem>>, %arg14: memref<32x64xbf16, #tpu.memory_space<vmem>>, %arg15: memref<1x64xf32, #tpu.memory_space<vmem>>, %arg16: memref<64x32xbf16, #tpu.memory_space<vmem>>, %arg17: memref<1x32xf32, #tpu.memory_space<vmem>>, %arg18: memref<1x8x32xf32, #tpu.memory_space<vmem>>, %arg19: memref<8x32xf32, #tpu.memory_space<vmem>>) attributes {dimension_semantics = [#tpu.dimension_semantics<parallel>, #tpu.dimension_semantics<parallel>], iteration_bounds = array<i64: 2, 2>, scalar_prefetch = 1 : i64, scratch_operands = 1 : i64, tpu.core_type = #tpu.core_type<tc>, window_params = [{transform_indices = @transform_0, window_bounds = array<i64: 1, 16, 32>}, {pipeline_mode = #tpu.pipeline_mode<synchronous>, transform_indices = @transform_1, window_bounds = array<i64: 1, 32>}, {pipeline_mode = #tpu.pipeline_mode<synchronous>, transform_indices = @transform_2, window_bounds = array<i64: 1, 32>}, {pipeline_mode = #tpu.pipeline_mode<synchronous>, transform_indices = @transform_3, window_bounds = array<i64: 32, 32>}, {pipeline_mode = #tpu.pipeline_mode<synchronous>, transform_indices = @transform_4, window_bounds = array<i64: 1, 32>}, {pipeline_mode = #tpu.pipeline_mode<synchronous>, transform_indices = @transform_5, window_bounds = array<i64: 32, 64>}, {pipeline_mode = #tpu.pipeline_mode<synchronous>, transform_indices = @transform_6, window_bounds = array<i64: 1, 64>}, {pipeline_mode = #tpu.pipeline_mode<synchronous>, transform_indices = @transform_7, window_bounds = array<i64: 32, 32>}, {pipeline_mode = #tpu.pipeline_mode<synchronous>, transform_indices = @transform_8, window_bounds = array<i64: 1, 32>}, {pipeline_mode = #tpu.pipeline_mode<synchronous>, transform_indices = @transform_9, window_bounds = array<i64: 1, 32>}, {pipeline_mode = #tpu.pipeline_mode<synchronous>, transform_indices = @transform_10, window_bounds = array<i64: 1, 32>}, {pipeline_mode = #tpu.pipeline_mode<synchronous>, transform_indices = @transform_11, window_bounds = array<i64: 32, 64>}, {pipeline_mode = #tpu.pipeline_mode<synchronous>, transform_indices = @transform_12, window_bounds = array<i64: 1, 64>}, {pipeline_mode = #tpu.pipeline_mode<synchronous>, transform_indices = @transform_13, window_bounds = array<i64: 64, 32>}, {pipeline_mode = #tpu.pipeline_mode<synchronous>, transform_indices = @transform_14, window_bounds = array<i64: 1, 32>}, {transform_indices = @transform_15, window_bounds = array<i64: 1, 8, 32>}]} {
    %0 = arith.index_cast %arg0 : i32 to index
    %1 = memref.load %arg2[%0] : memref<2xi32, #tpu.memory_space<smem>>
    %c0 = arith.constant 0 : index
    %c0_0 = arith.constant 0 : index
    %c0_1 = arith.constant 0 : index
    %2 = vector.load %arg3[%c0, %c0_0, %c0_1] : memref<1x16x32xf32, #tpu.memory_space<vmem>>, vector<1x16x32xf32>
    %3 = vector.shape_cast %2 : vector<1x16x32xf32> to vector<16x32xf32>
    %c8_i32 = arith.constant 8 : i32
    %4 = arith.muli %arg1, %c8_i32 : i32
    %5 = tpu.assume_multiple %4, 8 : i32
    %c0_2 = arith.constant 0 : index
    %6 = arith.index_cast %5 : i32 to index
    %c0_3 = arith.constant 0 : index
    %7 = vector.load %arg3[%c0_2, %6, %c0_3] : memref<1x16x32xf32, #tpu.memory_space<vmem>>, vector<1x8x32xf32>
    %8 = vector.shape_cast %7 : vector<1x8x32xf32> to vector<8x32xf32>
    %c0_4 = arith.constant 0 : index
    %c0_5 = arith.constant 0 : index
    %9 = vector.load %arg4[%c0_4, %c0_5] : memref<1x32xf32, #tpu.memory_space<vmem>>, vector<1x32xf32>
    %c0_6 = arith.constant 0 : index
    %c0_7 = arith.constant 0 : index
    %10 = vector.load %arg5[%c0_6, %c0_7] : memref<1x32xf32, #tpu.memory_space<vmem>>, vector<1x32xf32>
    %cst = arith.constant dense<0.000000e+00> : vector<8xf32>
    %11 = vector.multi_reduction <add>, %8, %cst [1] : vector<8x32xf32> to vector<8xf32>
    %12 = vector.shape_cast %11 : vector<8xf32> to vector<8x1xf32>
    %cst_8 = arith.constant 3.200000e+01 : f32
    %13 = vector.broadcast %cst_8 : f32 to vector<8x1xf32>
    %14 = arith.divf %12, %13 : vector<8x1xf32>
    %15 = vector.broadcast %14 : vector<8x1xf32> to vector<8x32xf32>
    %16 = arith.subf %8, %15 : vector<8x32xf32>
    %17 = arith.mulf %16, %16 : vector<8x32xf32>
    %cst_9 = arith.constant dense<0.000000e+00> : vector<8xf32>
    %18 = vector.multi_reduction <add>, %17, %cst_9 [1] : vector<8x32xf32> to vector<8xf32>
    %19 = vector.shape_cast %18 : vector<8xf32> to vector<8x1xf32>
    %cst_10 = arith.constant 3.200000e+01 : f32
    %20 = vector.broadcast %cst_10 : f32 to vector<8x1xf32>
    %21 = arith.divf %19, %20 : vector<8x1xf32>
    %22 = vector.broadcast %14 : vector<8x1xf32> to vector<8x32xf32>
    %23 = arith.subf %8, %22 : vector<8x32xf32>
    %cst_11 = arith.constant 9.99999974E-6 : f32
    %24 = vector.broadcast %cst_11 : f32 to vector<8x1xf32>
    %25 = arith.addf %21, %24 : vector<8x1xf32>
    %26 = math.rsqrt %25 : vector<8x1xf32>
    %27 = vector.broadcast %26 : vector<8x1xf32> to vector<8x32xf32>
    %28 = arith.mulf %23, %27 : vector<8x32xf32>
    %29 = vector.broadcast %9 : vector<1x32xf32> to vector<8x32xf32>
    %30 = arith.mulf %28, %29 : vector<8x32xf32>
    %31 = vector.broadcast %10 : vector<1x32xf32> to vector<8x32xf32>
    %32 = arith.addf %30, %31 : vector<8x32xf32>
    %33 = arith.truncf %32 : vector<8x32xf32> to vector<8x32xbf16>
    %c0_12 = arith.constant 0 : index
    %c0_13 = arith.constant 0 : index
    %34 = vector.load %arg6[%c0_12, %c0_13] : memref<32x32xbf16, #tpu.memory_space<vmem>>, vector<32x32xbf16>
    %cst_14 = arith.constant dense<0.000000e+00> : vector<8x32xf32>
    %35 = tpu.matmul %33, %34, %cst_14 {dimension_numbers = #tpu.dot_dimension_numbers<[1], [0], [0], [1], [0, 0, 1, 1], [], []>} : vector<8x32xbf16>, vector<32x32xbf16>, vector<8x32xf32> -> vector<8x32xf32>
    %c0_15 = arith.constant 0 : index
    %c0_16 = arith.constant 0 : index
    %36 = vector.load %arg7[%c0_15, %c0_16] : memref<1x32xf32, #tpu.memory_space<vmem>>, vector<1x32xf32>
    %37 = vector.broadcast %36 : vector<1x32xf32> to vector<8x32xf32>
    %38 = arith.addf %35, %37 : vector<8x32xf32>
    %cst_17 = arith.constant 0.353553385 : f32
    %39 = vector.broadcast %cst_17 : f32 to vector<8x32xf32>
    %40 = arith.mulf %38, %39 : vector<8x32xf32>
    %41 = arith.truncf %3 : vector<16x32xf32> to vector<16x32xbf16>
    %c0_18 = arith.constant 0 : index
    %c0_19 = arith.constant 0 : index
    %42 = vector.load %arg8[%c0_18, %c0_19] : memref<32x64xbf16, #tpu.memory_space<vmem>>, vector<32x64xbf16>
    %cst_20 = arith.constant dense<0.000000e+00> : vector<16x64xf32>
    %43 = tpu.matmul %41, %42, %cst_20 {dimension_numbers = #tpu.dot_dimension_numbers<[1], [0], [0], [1], [0, 0, 1, 1], [], []>} : vector<16x32xbf16>, vector<32x64xbf16>, vector<16x64xf32> -> vector<16x64xf32>
    %c0_21 = arith.constant 0 : index
    %c0_22 = arith.constant 0 : index
    %44 = vector.load %arg9[%c0_21, %c0_22] : memref<1x64xf32, #tpu.memory_space<vmem>>, vector<1x64xf32>
    %45 = vector.broadcast %44 : vector<1x64xf32> to vector<16x64xf32>
    %46 = arith.addf %43, %45 : vector<16x64xf32>
    %47 = vector.extract_strided_slice %46 {offsets = [0, 0], sizes = [16, 32], strides = [1, 1]} : vector<16x64xf32> to vector<16x32xf32>
    %48 = vector.extract_strided_slice %46 {offsets = [0, 32], sizes = [16, 32], strides = [1, 1]} : vector<16x64xf32> to vector<16x32xf32>
    %49 = tpu.iota {dimensions = array<i32: 1>} : vector<8x16xi32>
    %50 = vector.broadcast %1 : i32 to vector<8x16xi32>
    %51 = arith.cmpi slt, %49, %50 : vector<8x16xi32>
    %52 = vector.extract_strided_slice %40 {offsets = [0, 0], sizes = [8, 8], strides = [1, 1]} : vector<8x32xf32> to vector<8x8xf32>
    %53 = arith.truncf %52 : vector<8x8xf32> to vector<8x8xbf16>
    %54 = vector.extract_strided_slice %47 {offsets = [0, 0], sizes = [16, 8], strides = [1, 1]} : vector<16x32xf32> to vector<16x8xf32>
    %55 = arith.truncf %54 : vector<16x8xf32> to vector<16x8xbf16>
    %56 = vector.extract_strided_slice %48 {offsets = [0, 0], sizes = [16, 8], strides = [1, 1]} : vector<16x32xf32> to vector<16x8xf32>
    %57 = arith.truncf %56 : vector<16x8xf32> to vector<16x8xbf16>
    %cst_23 = arith.constant dense<0.000000e+00> : vector<8x16xf32>
    %58 = tpu.matmul %53, %55, %cst_23 {dimension_numbers = #tpu.dot_dimension_numbers<[1], [1], [0], [0], [0, 0, 1, 0], [], []>} : vector<8x8xbf16>, vector<16x8xbf16>, vector<8x16xf32> -> vector<8x16xf32>
    %cst_24 = arith.constant -1.000000e+30 : f32
    %59 = vector.broadcast %cst_24 : f32 to vector<8x16xf32>
    %60 = arith.select %51, %58, %59 : vector<8x16xi1>, vector<8x16xf32>
    %cst_25 = arith.constant dense<0xFF800000> : vector<8xf32>
    %61 = vector.multi_reduction <maximumf>, %60, %cst_25 [1] : vector<8x16xf32> to vector<8xf32>
    %62 = vector.shape_cast %61 : vector<8xf32> to vector<8x1xf32>
    %63 = vector.broadcast %62 : vector<8x1xf32> to vector<8x16xf32>
    %64 = arith.subf %60, %63 : vector<8x16xf32>
    %65 = math.exp %64 : vector<8x16xf32>
    %cst_26 = arith.constant dense<0.000000e+00> : vector<8xf32>
    %66 = vector.multi_reduction <add>, %65, %cst_26 [1] : vector<8x16xf32> to vector<8xf32>
    %67 = vector.shape_cast %66 : vector<8xf32> to vector<8x1xf32>
    %68 = arith.truncf %65 : vector<8x16xf32> to vector<8x16xbf16>
    %cst_27 = arith.constant dense<0.000000e+00> : vector<8x8xf32>
    %69 = tpu.matmul %68, %57, %cst_27 {dimension_numbers = #tpu.dot_dimension_numbers<[1], [0], [0], [1], [0, 0, 1, 1], [], []>} : vector<8x16xbf16>, vector<16x8xbf16>, vector<8x8xf32> -> vector<8x8xf32>
    %70 = tpu.reciprocal %67 {approx = true} : vector<8x1xf32> -> vector<8x1xf32>
    %71 = vector.broadcast %70 : vector<8x1xf32> to vector<8x8xf32>
    %72 = arith.mulf %69, %71 : vector<8x8xf32>
    %c0_28 = arith.constant 0 : index
    %c0_29 = arith.constant 0 : index
    %73 = vector.load %arg19[%c0_28, %c0_29] : memref<8x32xf32, #tpu.memory_space<vmem>>, vector<8x8xf32>
    tpu.vector_store %arg19[%c0_28, %c0_29], %72 {strides = array<i32>} : memref<8x32xf32, #tpu.memory_space<vmem>>, vector<8x8xf32>,
    %74 = vector.extract_strided_slice %40 {offsets = [0, 8], sizes = [8, 8], strides = [1, 1]} : vector<8x32xf32> to vector<8x8xf32>
    %75 = arith.truncf %74 : vector<8x8xf32> to vector<8x8xbf16>
    %76 = vector.extract_strided_slice %47 {offsets = [0, 8], sizes = [16, 8], strides = [1, 1]} : vector<16x32xf32> to vector<16x8xf32>
    %77 = arith.truncf %76 : vector<16x8xf32> to vector<16x8xbf16>
    %78 = vector.extract_strided_slice %48 {offsets = [0, 8], sizes = [16, 8], strides = [1, 1]} : vector<16x32xf32> to vector<16x8xf32>
    %79 = arith.truncf %78 : vector<16x8xf32> to vector<16x8xbf16>
    %cst_30 = arith.constant dense<0.000000e+00> : vector<8x16xf32>
    %80 = tpu.matmul %75, %77, %cst_30 {dimension_numbers = #tpu.dot_dimension_numbers<[1], [1], [0], [0], [0, 0, 1, 0], [], []>} : vector<8x8xbf16>, vector<16x8xbf16>, vector<8x16xf32> -> vector<8x16xf32>
    %cst_31 = arith.constant -1.000000e+30 : f32
    %81 = vector.broadcast %cst_31 : f32 to vector<8x16xf32>
    %82 = arith.select %51, %80, %81 : vector<8x16xi1>, vector<8x16xf32>
    %cst_32 = arith.constant dense<0xFF800000> : vector<8xf32>
    %83 = vector.multi_reduction <maximumf>, %82, %cst_32 [1] : vector<8x16xf32> to vector<8xf32>
    %84 = vector.shape_cast %83 : vector<8xf32> to vector<8x1xf32>
    %85 = vector.broadcast %84 : vector<8x1xf32> to vector<8x16xf32>
    %86 = arith.subf %82, %85 : vector<8x16xf32>
    %87 = math.exp %86 : vector<8x16xf32>
    %cst_33 = arith.constant dense<0.000000e+00> : vector<8xf32>
    %88 = vector.multi_reduction <add>, %87, %cst_33 [1] : vector<8x16xf32> to vector<8xf32>
    %89 = vector.shape_cast %88 : vector<8xf32> to vector<8x1xf32>
    %90 = arith.truncf %87 : vector<8x16xf32> to vector<8x16xbf16>
    %cst_34 = arith.constant dense<0.000000e+00> : vector<8x8xf32>
    %91 = tpu.matmul %90, %79, %cst_34 {dimension_numbers = #tpu.dot_dimension_numbers<[1], [0], [0], [1], [0, 0, 1, 1], [], []>} : vector<8x16xbf16>, vector<16x8xbf16>, vector<8x8xf32> -> vector<8x8xf32>
    %92 = tpu.reciprocal %89 {approx = true} : vector<8x1xf32> -> vector<8x1xf32>
    %93 = vector.broadcast %92 : vector<8x1xf32> to vector<8x8xf32>
    %94 = arith.mulf %91, %93 : vector<8x8xf32>
    %c0_35 = arith.constant 0 : index
    %c8 = arith.constant 8 : index
    %95 = vector.load %arg19[%c0_35, %c8] : memref<8x32xf32, #tpu.memory_space<vmem>>, vector<8x8xf32>
    tpu.vector_store %arg19[%c0_35, %c8], %94 {strides = array<i32>} : memref<8x32xf32, #tpu.memory_space<vmem>>, vector<8x8xf32>,
    %96 = vector.extract_strided_slice %40 {offsets = [0, 16], sizes = [8, 8], strides = [1, 1]} : vector<8x32xf32> to vector<8x8xf32>
    %97 = arith.truncf %96 : vector<8x8xf32> to vector<8x8xbf16>
    %98 = vector.extract_strided_slice %47 {offsets = [0, 16], sizes = [16, 8], strides = [1, 1]} : vector<16x32xf32> to vector<16x8xf32>
    %99 = arith.truncf %98 : vector<16x8xf32> to vector<16x8xbf16>
    %100 = vector.extract_strided_slice %48 {offsets = [0, 16], sizes = [16, 8], strides = [1, 1]} : vector<16x32xf32> to vector<16x8xf32>
    %101 = arith.truncf %100 : vector<16x8xf32> to vector<16x8xbf16>
    %cst_36 = arith.constant dense<0.000000e+00> : vector<8x16xf32>
    %102 = tpu.matmul %97, %99, %cst_36 {dimension_numbers = #tpu.dot_dimension_numbers<[1], [1], [0], [0], [0, 0, 1, 0], [], []>} : vector<8x8xbf16>, vector<16x8xbf16>, vector<8x16xf32> -> vector<8x16xf32>
    %cst_37 = arith.constant -1.000000e+30 : f32
    %103 = vector.broadcast %cst_37 : f32 to vector<8x16xf32>
    %104 = arith.select %51, %102, %103 : vector<8x16xi1>, vector<8x16xf32>
    %cst_38 = arith.constant dense<0xFF800000> : vector<8xf32>
    %105 = vector.multi_reduction <maximumf>, %104, %cst_38 [1] : vector<8x16xf32> to vector<8xf32>
    %106 = vector.shape_cast %105 : vector<8xf32> to vector<8x1xf32>
    %107 = vector.broadcast %106 : vector<8x1xf32> to vector<8x16xf32>
    %108 = arith.subf %104, %107 : vector<8x16xf32>
    %109 = math.exp %108 : vector<8x16xf32>
    %cst_39 = arith.constant dense<0.000000e+00> : vector<8xf32>
    %110 = vector.multi_reduction <add>, %109, %cst_39 [1] : vector<8x16xf32> to vector<8xf32>
    %111 = vector.shape_cast %110 : vector<8xf32> to vector<8x1xf32>
    %112 = arith.truncf %109 : vector<8x16xf32> to vector<8x16xbf16>
    %cst_40 = arith.constant dense<0.000000e+00> : vector<8x8xf32>
    %113 = tpu.matmul %112, %101, %cst_40 {dimension_numbers = #tpu.dot_dimension_numbers<[1], [0], [0], [1], [0, 0, 1, 1], [], []>} : vector<8x16xbf16>, vector<16x8xbf16>, vector<8x8xf32> -> vector<8x8xf32>
    %114 = tpu.reciprocal %111 {approx = true} : vector<8x1xf32> -> vector<8x1xf32>
    %115 = vector.broadcast %114 : vector<8x1xf32> to vector<8x8xf32>
    %116 = arith.mulf %113, %115 : vector<8x8xf32>
    %c0_41 = arith.constant 0 : index
    %c16 = arith.constant 16 : index
    %117 = vector.load %arg19[%c0_41, %c16] : memref<8x32xf32, #tpu.memory_space<vmem>>, vector<8x8xf32>
    tpu.vector_store %arg19[%c0_41, %c16], %116 {strides = array<i32>} : memref<8x32xf32, #tpu.memory_space<vmem>>, vector<8x8xf32>,
    %118 = vector.extract_strided_slice %40 {offsets = [0, 24], sizes = [8, 8], strides = [1, 1]} : vector<8x32xf32> to vector<8x8xf32>
    %119 = arith.truncf %118 : vector<8x8xf32> to vector<8x8xbf16>
    %120 = vector.extract_strided_slice %47 {offsets = [0, 24], sizes = [16, 8], strides = [1, 1]} : vector<16x32xf32> to vector<16x8xf32>
    %121 = arith.truncf %120 : vector<16x8xf32> to vector<16x8xbf16>
    %122 = vector.extract_strided_slice %48 {offsets = [0, 24], sizes = [16, 8], strides = [1, 1]} : vector<16x32xf32> to vector<16x8xf32>
    %123 = arith.truncf %122 : vector<16x8xf32> to vector<16x8xbf16>
    %cst_42 = arith.constant dense<0.000000e+00> : vector<8x16xf32>
    %124 = tpu.matmul %119, %121, %cst_42 {dimension_numbers = #tpu.dot_dimension_numbers<[1], [1], [0], [0], [0, 0, 1, 0], [], []>} : vector<8x8xbf16>, vector<16x8xbf16>, vector<8x16xf32> -> vector<8x16xf32>
    %cst_43 = arith.constant -1.000000e+30 : f32
    %125 = vector.broadcast %cst_43 : f32 to vector<8x16xf32>
    %126 = arith.select %51, %124, %125 : vector<8x16xi1>, vector<8x16xf32>
    %cst_44 = arith.constant dense<0xFF800000> : vector<8xf32>
    %127 = vector.multi_reduction <maximumf>, %126, %cst_44 [1] : vector<8x16xf32> to vector<8xf32>
    %128 = vector.shape_cast %127 : vector<8xf32> to vector<8x1xf32>
    %129 = vector.broadcast %128 : vector<8x1xf32> to vector<8x16xf32>
    %130 = arith.subf %126, %129 : vector<8x16xf32>
    %131 = math.exp %130 : vector<8x16xf32>
    %cst_45 = arith.constant dense<0.000000e+00> : vector<8xf32>
    %132 = vector.multi_reduction <add>, %131, %cst_45 [1] : vector<8x16xf32> to vector<8xf32>
    %133 = vector.shape_cast %132 : vector<8xf32> to vector<8x1xf32>
    %134 = arith.truncf %131 : vector<8x16xf32> to vector<8x16xbf16>
    %cst_46 = arith.constant dense<0.000000e+00> : vector<8x8xf32>
    %135 = tpu.matmul %134, %123, %cst_46 {dimension_numbers = #tpu.dot_dimension_numbers<[1], [0], [0], [1], [0, 0, 1, 1], [], []>} : vector<8x16xbf16>, vector<16x8xbf16>, vector<8x8xf32> -> vector<8x8xf32>
    %136 = tpu.reciprocal %133 {approx = true} : vector<8x1xf32> -> vector<8x1xf32>
    %137 = vector.broadcast %136 : vector<8x1xf32> to vector<8x8xf32>
    %138 = arith.mulf %135, %137 : vector<8x8xf32>
    %c0_47 = arith.constant 0 : index
    %c24 = arith.constant 24 : index
    %139 = vector.load %arg19[%c0_47, %c24] : memref<8x32xf32, #tpu.memory_space<vmem>>, vector<8x8xf32>
    tpu.vector_store %arg19[%c0_47, %c24], %138 {strides = array<i32>} : memref<8x32xf32, #tpu.memory_space<vmem>>, vector<8x8xf32>,
    %c0_48 = arith.constant 0 : index
    %c0_49 = arith.constant 0 : index
    %140 = vector.load %arg19[%c0_48, %c0_49] : memref<8x32xf32, #tpu.memory_space<vmem>>, vector<8x32xf32>
    %141 = arith.truncf %140 : vector<8x32xf32> to vector<8x32xbf16>
    %c0_50 = arith.constant 0 : index
    %c0_51 = arith.constant 0 : index
    %142 = vector.load %arg10[%c0_50, %c0_51] : memref<32x32xbf16, #tpu.memory_space<vmem>>, vector<32x32xbf16>
    %cst_52 = arith.constant dense<0.000000e+00> : vector<8x32xf32>
    %143 = tpu.matmul %141, %142, %cst_52 {dimension_numbers = #tpu.dot_dimension_numbers<[1], [0], [0], [1], [0, 0, 1, 1], [], []>} : vector<8x32xbf16>, vector<32x32xbf16>, vector<8x32xf32> -> vector<8x32xf32>
    %c0_53 = arith.constant 0 : index
    %c0_54 = arith.constant 0 : index
    %144 = vector.load %arg11[%c0_53, %c0_54] : memref<1x32xf32, #tpu.memory_space<vmem>>, vector<1x32xf32>
    %145 = vector.broadcast %144 : vector<1x32xf32> to vector<8x32xf32>
    %146 = arith.addf %143, %145 : vector<8x32xf32>
    %147 = arith.addf %8, %146 : vector<8x32xf32>
    %c0_55 = arith.constant 0 : index
    %c0_56 = arith.constant 0 : index
    %148 = vector.load %arg12[%c0_55, %c0_56] : memref<1x32xf32, #tpu.memory_space<vmem>>, vector<1x32xf32>
    %c0_57 = arith.constant 0 : index
    %c0_58 = arith.constant 0 : index
    %149 = vector.load %arg13[%c0_57, %c0_58] : memref<1x32xf32, #tpu.memory_space<vmem>>, vector<1x32xf32>
    %cst_59 = arith.constant dense<0.000000e+00> : vector<8xf32>
    %150 = vector.multi_reduction <add>, %147, %cst_59 [1] : vector<8x32xf32> to vector<8xf32>
    %151 = vector.shape_cast %150 : vector<8xf32> to vector<8x1xf32>
    %cst_60 = arith.constant 3.200000e+01 : f32
    %152 = vector.broadcast %cst_60 : f32 to vector<8x1xf32>
    %153 = arith.divf %151, %152 : vector<8x1xf32>
    %154 = vector.broadcast %153 : vector<8x1xf32> to vector<8x32xf32>
    %155 = arith.subf %147, %154 : vector<8x32xf32>
    %156 = arith.mulf %155, %155 : vector<8x32xf32>
    %cst_61 = arith.constant dense<0.000000e+00> : vector<8xf32>
    %157 = vector.multi_reduction <add>, %156, %cst_61 [1] : vector<8x32xf32> to vector<8xf32>
    %158 = vector.shape_cast %157 : vector<8xf32> to vector<8x1xf32>
    %cst_62 = arith.constant 3.200000e+01 : f32
    %159 = vector.broadcast %cst_62 : f32 to vector<8x1xf32>
    %160 = arith.divf %158, %159 : vector<8x1xf32>
    %161 = vector.broadcast %153 : vector<8x1xf32> to vector<8x32xf32>
    %162 = arith.subf %147, %161 : vector<8x32xf32>
    %cst_63 = arith.constant 9.99999974E-6 : f32
    %163 = vector.broadcast %cst_63 : f32 to vector<8x1xf32>
    %164 = arith.addf %160, %163 : vector<8x1xf32>
    %165 = math.rsqrt %164 : vector<8x1xf32>
    %166 = vector.broadcast %165 : vector<8x1xf32> to vector<8x32xf32>
    %167 = arith.mulf %162, %166 : vector<8x32xf32>
    %168 = vector.broadcast %148 : vector<1x32xf32> to vector<8x32xf32>
    %169 = arith.mulf %167, %168 : vector<8x32xf32>
    %170 = vector.broadcast %149 : vector<1x32xf32> to vector<8x32xf32>
    %171 = arith.addf %169, %170 : vector<8x32xf32>
    %172 = arith.truncf %171 : vector<8x32xf32> to vector<8x32xbf16>
    %c0_64 = arith.constant 0 : index
    %c0_65 = arith.constant 0 : index
    %173 = vector.load %arg14[%c0_64, %c0_65] : memref<32x64xbf16, #tpu.memory_space<vmem>>, vector<32x64xbf16>
    %cst_66 = arith.constant dense<0.000000e+00> : vector<8x64xf32>
    %174 = tpu.matmul %172, %173, %cst_66 {dimension_numbers = #tpu.dot_dimension_numbers<[1], [0], [0], [1], [0, 0, 1, 1], [], []>} : vector<8x32xbf16>, vector<32x64xbf16>, vector<8x64xf32> -> vector<8x64xf32>
    %c0_67 = arith.constant 0 : index
    %c0_68 = arith.constant 0 : index
    %175 = vector.load %arg15[%c0_67, %c0_68] : memref<1x64xf32, #tpu.memory_space<vmem>>, vector<1x64xf32>
    %176 = vector.broadcast %175 : vector<1x64xf32> to vector<8x64xf32>
    %177 = arith.addf %174, %176 : vector<8x64xf32>
    %cst_69 = arith.constant 5.000000e-01 : f32
    %178 = vector.broadcast %cst_69 : f32 to vector<8x64xf32>
    %179 = arith.mulf %178, %177 : vector<8x64xf32>
    %cst_70 = arith.constant 0.707106769 : f32
    %180 = vector.broadcast %cst_70 : f32 to vector<8x64xf32>
    %181 = arith.mulf %177, %180 : vector<8x64xf32>
    %cst_71 = arith.constant 0.000000e+00 : f32
    %182 = vector.broadcast %cst_71 : f32 to vector<8x64xf32>
    %183 = arith.cmpf oge, %181, %182 : vector<8x64xf32>
    %cst_72 = arith.constant 1.000000e+00 : f32
    %cst_73 = arith.constant -1.000000e+00 : f32
    %184 = vector.broadcast %cst_72 : f32 to vector<8x64xf32>
    %185 = vector.broadcast %cst_73 : f32 to vector<8x64xf32>
    %186 = arith.select %183, %184, %185 : vector<8x64xi1>, vector<8x64xf32>
    %187 = math.absf %181 : vector<8x64xf32>
    %cst_74 = arith.constant 0.327591091 : f32
    %188 = vector.broadcast %cst_74 : f32 to vector<8x64xf32>
    %189 = arith.mulf %188, %187 : vector<8x64xf32>
    %cst_75 = arith.constant 1.000000e+00 : f32
    %190 = vector.broadcast %cst_75 : f32 to vector<8x64xf32>
    %191 = arith.addf %190, %189 : vector<8x64xf32>
    %192 = tpu.reciprocal %191 {approx = true} : vector<8x64xf32> -> vector<8x64xf32>
    %cst_76 = arith.constant 1.06140542 : f32
    %193 = vector.broadcast %cst_76 : f32 to vector<8x64xf32>
    %194 = arith.mulf %193, %192 : vector<8x64xf32>
    %cst_77 = arith.constant -1.45315206 : f32
    %195 = vector.broadcast %cst_77 : f32 to vector<8x64xf32>
    %196 = arith.addf %194, %195 : vector<8x64xf32>
    %197 = arith.mulf %196, %192 : vector<8x64xf32>
    %cst_78 = arith.constant 1.42141378 : f32
    %198 = vector.broadcast %cst_78 : f32 to vector<8x64xf32>
    %199 = arith.addf %197, %198 : vector<8x64xf32>
    %200 = arith.mulf %199, %192 : vector<8x64xf32>
    %cst_79 = arith.constant -0.284496725 : f32
    %201 = vector.broadcast %cst_79 : f32 to vector<8x64xf32>
    %202 = arith.addf %200, %201 : vector<8x64xf32>
    %203 = arith.mulf %202, %192 : vector<8x64xf32>
    %cst_80 = arith.constant 0.254829586 : f32
    %204 = vector.broadcast %cst_80 : f32 to vector<8x64xf32>
    %205 = arith.addf %203, %204 : vector<8x64xf32>
    %206 = arith.mulf %205, %192 : vector<8x64xf32>
    %cst_81 = arith.constant 0.000000e+00 : f32
    %207 = vector.broadcast %cst_81 : f32 to vector<8x64xf32>
    %208 = arith.subf %207, %187 : vector<8x64xf32>
    %209 = arith.mulf %208, %187 : vector<8x64xf32>
    %210 = math.exp %209 : vector<8x64xf32>
    %211 = arith.mulf %206, %210 : vector<8x64xf32>
    %cst_82 = arith.constant 1.000000e+00 : f32
    %212 = vector.broadcast %cst_82 : f32 to vector<8x64xf32>
    %213 = arith.subf %212, %211 : vector<8x64xf32>
    %214 = arith.mulf %186, %213 : vector<8x64xf32>
    %cst_83 = arith.constant 1.000000e+00 : f32
    %215 = vector.broadcast %cst_83 : f32 to vector<8x64xf32>
    %216 = arith.addf %215, %214 : vector<8x64xf32>
    %217 = arith.mulf %179, %216 : vector<8x64xf32>
    %218 = arith.truncf %217 : vector<8x64xf32> to vector<8x64xbf16>
    %c0_84 = arith.constant 0 : index
    %c0_85 = arith.constant 0 : index
    %219 = vector.load %arg16[%c0_84, %c0_85] : memref<64x32xbf16, #tpu.memory_space<vmem>>, vector<64x32xbf16>
    %cst_86 = arith.constant dense<0.000000e+00> : vector<8x32xf32>
    %220 = tpu.matmul %218, %219, %cst_86 {dimension_numbers = #tpu.dot_dimension_numbers<[1], [0], [0], [1], [0, 0, 1, 1], [], []>} : vector<8x64xbf16>, vector<64x32xbf16>, vector<8x32xf32> -> vector<8x32xf32>
    %c0_87 = arith.constant 0 : index
    %c0_88 = arith.constant 0 : index
    %221 = vector.load %arg17[%c0_87, %c0_88] : memref<1x32xf32, #tpu.memory_space<vmem>>, vector<1x32xf32>
    %222 = vector.broadcast %221 : vector<1x32xf32> to vector<8x32xf32>
    %223 = arith.addf %220, %222 : vector<8x32xf32>
    %224 = arith.addf %147, %223 : vector<8x32xf32>
    %c0_89 = arith.constant 0 : index
    %c0_90 = arith.constant 0 : index
    %c0_91 = arith.constant 0 : index
    %225 = vector.load %arg18[%c0_89, %c0_90, %c0_91] : memref<1x8x32xf32, #tpu.memory_space<vmem>>, vector<1x8x32xf32>
    %226 = vector.shape_cast %225 : vector<1x8x32xf32> to vector<8x32xf32>
    %227 = vector.shape_cast %224 : vector<8x32xf32> to vector<1x8x32xf32>
    tpu.vector_store %arg18[%c0_89, %c0_90, %c0_91], %227 {strides = array<i32>} : memref<1x8x32xf32, #tpu.memory_space<vmem>>, vector<1x8x32xf32>,
    return
  }
  func.func @transform_0(%arg0: i32, %arg1: i32, %arg2: memref<2xi32, #tpu.memory_space<smem>>) -> (i32, i32, i32) {
    %c0_i32 = arith.constant 0 : i32
    %c0_i32_0 = arith.constant 0 : i32
    %c0_i32_1 = arith.constant 0 : i32
    return %arg0, %c0_i32, %c0_i32_0 : i32, i32, i32
  }
  func.func @transform_1(%arg0: i32, %arg1: i32, %arg2: memref<2xi32, #tpu.memory_space<smem>>) -> (i32, i32) {
    %c0_i32 = arith.constant 0 : i32
    %c0_i32_0 = arith.constant 0 : i32
    %c0_i32_1 = arith.constant 0 : i32
    return %c0_i32, %c0_i32_0 : i32, i32
  }
  func.func @transform_2(%arg0: i32, %arg1: i32, %arg2: memref<2xi32, #tpu.memory_space<smem>>) -> (i32, i32) {
    %c0_i32 = arith.constant 0 : i32
    %c0_i32_0 = arith.constant 0 : i32
    %c0_i32_1 = arith.constant 0 : i32
    return %c0_i32, %c0_i32_0 : i32, i32
  }
  func.func @transform_3(%arg0: i32, %arg1: i32, %arg2: memref<2xi32, #tpu.memory_space<smem>>) -> (i32, i32) {
    %c0_i32 = arith.constant 0 : i32
    %c0_i32_0 = arith.constant 0 : i32
    %c0_i32_1 = arith.constant 0 : i32
    return %c0_i32, %c0_i32_0 : i32, i32
  }
  func.func @transform_4(%arg0: i32, %arg1: i32, %arg2: memref<2xi32, #tpu.memory_space<smem>>) -> (i32, i32) {
    %c0_i32 = arith.constant 0 : i32
    %c0_i32_0 = arith.constant 0 : i32
    %c0_i32_1 = arith.constant 0 : i32
    return %c0_i32, %c0_i32_0 : i32, i32
  }
  func.func @transform_5(%arg0: i32, %arg1: i32, %arg2: memref<2xi32, #tpu.memory_space<smem>>) -> (i32, i32) {
    %c0_i32 = arith.constant 0 : i32
    %c0_i32_0 = arith.constant 0 : i32
    %c0_i32_1 = arith.constant 0 : i32
    return %c0_i32, %c0_i32_0 : i32, i32
  }
  func.func @transform_6(%arg0: i32, %arg1: i32, %arg2: memref<2xi32, #tpu.memory_space<smem>>) -> (i32, i32) {
    %c0_i32 = arith.constant 0 : i32
    %c0_i32_0 = arith.constant 0 : i32
    %c0_i32_1 = arith.constant 0 : i32
    return %c0_i32, %c0_i32_0 : i32, i32
  }
  func.func @transform_7(%arg0: i32, %arg1: i32, %arg2: memref<2xi32, #tpu.memory_space<smem>>) -> (i32, i32) {
    %c0_i32 = arith.constant 0 : i32
    %c0_i32_0 = arith.constant 0 : i32
    %c0_i32_1 = arith.constant 0 : i32
    return %c0_i32, %c0_i32_0 : i32, i32
  }
  func.func @transform_8(%arg0: i32, %arg1: i32, %arg2: memref<2xi32, #tpu.memory_space<smem>>) -> (i32, i32) {
    %c0_i32 = arith.constant 0 : i32
    %c0_i32_0 = arith.constant 0 : i32
    %c0_i32_1 = arith.constant 0 : i32
    return %c0_i32, %c0_i32_0 : i32, i32
  }
  func.func @transform_9(%arg0: i32, %arg1: i32, %arg2: memref<2xi32, #tpu.memory_space<smem>>) -> (i32, i32) {
    %c0_i32 = arith.constant 0 : i32
    %c0_i32_0 = arith.constant 0 : i32
    %c0_i32_1 = arith.constant 0 : i32
    return %c0_i32, %c0_i32_0 : i32, i32
  }
  func.func @transform_10(%arg0: i32, %arg1: i32, %arg2: memref<2xi32, #tpu.memory_space<smem>>) -> (i32, i32) {
    %c0_i32 = arith.constant 0 : i32
    %c0_i32_0 = arith.constant 0 : i32
    %c0_i32_1 = arith.constant 0 : i32
    return %c0_i32, %c0_i32_0 : i32, i32
  }
  func.func @transform_11(%arg0: i32, %arg1: i32, %arg2: memref<2xi32, #tpu.memory_space<smem>>) -> (i32, i32) {
    %c0_i32 = arith.constant 0 : i32
    %c0_i32_0 = arith.constant 0 : i32
    %c0_i32_1 = arith.constant 0 : i32
    return %c0_i32, %c0_i32_0 : i32, i32
  }
  func.func @transform_12(%arg0: i32, %arg1: i32, %arg2: memref<2xi32, #tpu.memory_space<smem>>) -> (i32, i32) {
    %c0_i32 = arith.constant 0 : i32
    %c0_i32_0 = arith.constant 0 : i32
    %c0_i32_1 = arith.constant 0 : i32
    return %c0_i32, %c0_i32_0 : i32, i32
  }
  func.func @transform_13(%arg0: i32, %arg1: i32, %arg2: memref<2xi32, #tpu.memory_space<smem>>) -> (i32, i32) {
    %c0_i32 = arith.constant 0 : i32
    %c0_i32_0 = arith.constant 0 : i32
    %c0_i32_1 = arith.constant 0 : i32
    return %c0_i32, %c0_i32_0 : i32, i32
  }
  func.func @transform_14(%arg0: i32, %arg1: i32, %arg2: memref<2xi32, #tpu.memory_space<smem>>) -> (i32, i32) {
    %c0_i32 = arith.constant 0 : i32
    %c0_i32_0 = arith.constant 0 : i32
    %c0_i32_1 = arith.constant 0 : i32
    return %c0_i32, %c0_i32_0 : i32, i32
  }
  func.func @transform_15(%arg0: i32, %arg1: i32, %arg2: memref<2xi32, #tpu.memory_space<smem>>) -> (i32, i32, i32) {
    %c0_i32 = arith.constant 0 : i32
    %c0_i32_0 = arith.constant 0 : i32
    return %arg0, %arg1, %c0_i32 : i32, i32, i32
  }
}

</mosaic_0001>

<bundles_post_ra>
// kernel: tpu_custom_call.1
= control target key start
LH: loop header
LB: loop body
LE: loop exit
PB: predicated region body
PF: predicated region fallthrough
CT: control target
= control target key end

     0   :  { %s2359_s21 = smov [#allocation4]   ;;  %s2845_s0 = inlined_call_operand.hbm [shape: s32[2], index: 0, kind: input, shape index: {}]   ;;  %s2846_s1 = inlined_call_operand.vmem [shape: f32[2,16,32], index: 1, kind: input, shape index: {}]   ;;  %s2847_s2 = inlined_call_operand.hbm [shape: f32[1,32], index: 2, kind: input, shape index: {}]   ;;  %s2848_s3 = inlined_call_operand.hbm [shape: f32[1,32], index: 3, kind: input, shape index: {}]   ;;  %s2849_s4 = inlined_call_operand.vmem [shape: bf16[32,32], index: 4, kind: input, shape index: {}]   ;;  %s2850_s5 = inlined_call_operand.hbm [shape: f32[1,32], index: 5, kind: input, shape index: {}]   ;;  %s2851_s6 = inlined_call_operand.hbm [shape: bf16[32,64], index: 6, kind: input, shape index: {}]   ;;  %s2852_s7 = inlined_call_operand.hbm [shape: f32[1,64], index: 7, kind: input, shape index: {}]   ;;  %s2853_s8 = inlined_call_operand.hbm [shape: bf16[32,32], index: 8, kind: input, shape index: {}]   ;;  %s2854_s9 = inlined_call_operand.hbm [shape: f32[1,32], index: 9, kind: input, shape index: {}]   ;;  %s2855_s10 = inlined_call_operand.vmem [shape: f32[1,32], index: 10, kind: input, shape index: {}]   ;;  %s2856_s11 = inlined_call_operand.vmem [shape: f32[1,32], index: 11, kind: input, shape index: {}]   ;;  %s2857_s12 = inlined_call_operand.vmem [shape: bf16[32,64], index: 12, kind: input, shape index: {}]   ;;  %s2858_s13 = inlined_call_operand.vmem [shape: f32[1,64], index: 13, kind: input, shape index: {}]   ;;  %s2859_s14 = inlined_call_operand.vmem [shape: bf16[64,32], index: 14, kind: input, shape index: {}]   ;;  %s2860_s15 = inlined_call_operand.vmem [shape: f32[1,32], index: 15, kind: input, shape index: {}]   ;;  %s2861_s16 = inlined_call_operand.hbm [shape: f32[2,16,32], index: 16, kind: output, shape index: {}]  }
   0x1   :  { %2874 = sst [smem:[#allocation32_spill]] %s2845_s0 }
   0x2   :  { %2875 = sst [smem:[#allocation33_spill]] %s2848_s3 }
   0x3   :  { %2876 = sst [smem:[#allocation34_spill]] %s2851_s6 }
   0x4   :  { %2877 = sst [smem:[#allocation35_spill]] %s2855_s10 }
   0x5   :  { %2878 = sst [smem:[#allocation36_spill]] %s2860_s15 }
   0x6   :  { %2879 = sst [smem:[#allocation37_spill]] %s2861_s16 }
   0x7   :  { %s2880_s10 = sld [smem:[#allocation32_spill]] }
   0xd   :  { %22 = dma.hbm_to_smem %s2880_s10, 16, %s2359_s21, [#allocation3] }
   0xe   :  { %2305 = dma.done.wait [#allocation3], 16 }
   0xf   :  { %2306 = vsyncadd [#allocation3], 4294967280 }
  0x10   :  { %24 = sfence }
  0x11   :  { %25 = vsyncpa [#allocation6], 0 }
  0x12   :  { %26 = vsyncpa [#allocation9], 0 }
  0x13   :  { %27 = vsyncpa [#allocation12], 0 }
  0x14   :  { %28 = vsyncpa [#allocation15], 0 }
  0x15   :  { %29 = vsyncpa [#allocation7], 0 }
  0x16   :  { %31 = vsyncpa [#allocation7 + $0x1], 0  ;;  %s2471_s24 = smov 0   ;;  %s2473_s25 = smov 0  }
  0x17   :  { %s2475_s26 = smov 0   ;;  %s2477_s27 = smov 0  }
  0x18   :  { %s2479_s28 = smov 0   ;;  %s2481_s10 = smov 0  }
  0x19   :  { %s2483_s29 = smov 0   ;;  %s2485_s30 = smov 0  }
  0x1a LB: > { %2881 = sst [smem:[#allocation24_spill]] %s2329_s24  ;;  %s1675_s0 = sadd.s32 4294967295, %s2357_s30   ;;  %s2357_s30 = sphi %s2485_s30, %s37_s30   ;;  %s2353_s29 = sphi %s2483_s29, %s2914_s29   ;;  %s2349_s10 = sphi %s2481_s10, %s2913_s10   ;;  %s2345_s28 = sphi %s2479_s28, %s2912_s28   ;;  %s2341_s27 = sphi %s2477_s27, %s2911_s27   ;;  %s2337_s26 = sphi %s2475_s26, %s2910_s26   ;;  %s2333_s25 = sphi %s2473_s25, %s2916_s25   ;;  %s2329_s24 = sphi %s2471_s24, %s2915_s24  }
  0x1b   : > { %2882 = sst [smem:[#allocation25_spill]] %s2337_s26  ;;  %s1676_s17 = sadd.s32 4294967294, %s2357_s30  }
  0x1c   : > { %2883 = sst [smem:[#allocation26_spill]] %s2349_s10  ;;  %s46_s18 = sadd.s32 1, %s2349_s10 }
  0x1d   : > { %2884 = sst [smem:[#allocation27_spill]] %s2353_s29  ;;  %s49_s19 = sadd.s32 1, %s2353_s29 }
  0x1e   : > { %p47_p0 = scmp.ge.s32.totalorder %s46_s18, 2  ;;  %s378_s20 = sadd.s32 1, %s2337_s26 }
  0x1f   : > { %p388_p1 = scmp.ne.s32.totalorder %s2337_s26, %s2333_s25  ;;  %p389_p2 = scmp.eq.s32.totalorder %s1675_s0, 3 }
  0x20   : > { %s2918_s18 = smov (%p47_p0, %s46_s18), 0  ;;  %s2920_s19 = smov (!%p47_p0, %s49_s19), %s2353_s29 }
  0x21   : > { %2885 = sst [smem:[#allocation28_spill]] %s2918_s18  ;;  %s374_s21 = ssub.s32 %s2349_s10, %s2918_s18 }
  0x22   : > { %p2523_p3 = por %p389_p2, %p388_p1  ;;  %p51_p4 = scmp.ge.s32.totalorder %s2920_s19, 2 }
  0x23   : > { %p394_p5 = scmp.ne.s32.totalorder %s2333_s25, %s2329_s24  ;;  %p395_p6 = scmp.eq.s32.totalorder %s1676_s17, 3 }
  0x24   : > { %s2886_s22 = scalar_select %p2523_p3, 1, 0 }
  0x25   : > { %p1677_p7 = scmp.ge.s32.totalorder %s2357_s30, 1  ;;  %s2922_s19 = smov (%p51_p4, %s2920_s19), 0 }
  0x26   : > { %2887 = sst [smem:[#allocation29_spill]] %s2922_s19  ;;  %p2532_p8 = por %p395_p6, %p394_p5 }
  0x27   : > { %p402_p9 = scmp.lt.s32.totalorder %s2357_s30, 5  ;;  %s373_s16 = ssub.s32 %s2353_s29, %s2922_s19 }
  0x28   : > { %s2888_s23 = scalar_select %p2532_p8, 1, 0 }
  0x29   : > { %s375_s15 = sor.u32 %s374_s21, %s373_s16  ;;  %p2539_p10 = pnand %p1677_p7, %p402_p9 }
  0x2a   : > { %2889 = sst [smem:[#allocation30_spill]] %s2888_s23  ;;  %p376_p11 = scmp.eq.s32.totalorder %s375_s15, 0 }
  0x2b   : > { %s2890_s18 = scalar_select %p2539_p10, 1, 0 }
  0x2c   : > { %p2543_p12 = scmp.eq.s32.totalorder %s1675_s0, 0  ;;  %p1893_p13 = pneg %p2539_p10 }
  0x2d   : > { %s2550_s17 = scalar_select %p376_p11, %s2337_s26, %s378_s20  }
  0x2e   : > { %s2891_s10 = scalar_select %p2543_p12, 1, 0 }
  0x2f   : > { %2892 = sst [smem:[#allocation31_spill]] %s2550_s17  ;;  %p2554_p0 = pnand %p2543_p12, %p1893_p13 }
  0x30   : > { %s2360_s16 = smov [#allocation8]   ;;  %s2361_s19 = smov [#allocation11]  }
  0x31   : > { %s426_s21 = sshll.u32 %s2360_s16, 4  ;;  %s450_s15 = sshll.u32 %s2361_s19, 4  ;;  %s427_s21 = int_to_ptr.vmem [resolvable:$true] %s426_s21  ;;  %s451_s15 = int_to_ptr.vmem [resolvable:$true] %s450_s15 }
  0x32   : > { %p2560_p1 = pneg %p2554_p0  ;;  %s2076_s29 = scalar_lea.vmem %s427_s21, 16 }
  0x33   : > { %p2077_p2 = scmp.ne.s32.totalorder %s427_s21, %s2076_s29  ;;  %s2083_s20 = scalar_lea.vmem %s427_s21, 32 }
  0x34   : > { %p2084_p6 = scmp.lt.s32.totalorder %s427_s21, %s427_s21  ;;  %p2085_p7 = scmp.lt.s32.totalorder %s2083_s20, %s2076_s29 }
  0x35   : > { %p2079_p4 = pnand %p2077_p2, %p2560_p1 }
  0x36   : > { %p2086_p9 = por %p2085_p7, %p2084_p6 }
  0x37   : > { %p2080_p5 = pneg %p2079_p4 }
  0x39   : > { %p2087_p11 = pnand %p2086_p9, %p2080_p5 }
  0x3b   : > { %2090 = shalt.err (!%p2087_p11)
}
  0x3c   : > { %s2895_s3 = sld [smem:[#allocation33_spill]]  ;;  %s2102_s17 = scalar_lea.vmem %s451_s15, 256 }
  0x3d   : > { %p2103_p13 = scmp.ne.s32.totalorder %s451_s15, %s2102_s17  ;;  %p2110_p4 = scmp.lt.s32.totalorder %s451_s15, %s451_s15 }
  0x3e   : > { %p2111_p3 = scmp.lt.s32.totalorder %s2102_s17, %s2102_s17 }
  0x3f   : > { %p2105_p8 = pnand %p2103_p13, %p2560_p1 }
  0x40   : > { %p2112_p12 = por %p2111_p3, %p2110_p4 }
  0x41   : > { %p2106_p2 = pneg %p2105_p8 }
  0x42   : > { %1899 = dma.hbm_to_vmem [thread:$0]  (!%p2554_p0), %s2895_s3, 16, %s427_s21, [#allocation9]  }
  0x43   : > { %p2113_p10 = pnand %p2112_p12, %p2106_p2 }
  0x45   : > { %2116 = shalt.err (!%p2113_p10)
}
  0x46   : > { %s2362_s29 = smov 64   ;;  %s2363_s20 = smov 4  }
  0x47   : > { %s2896_s6 = sld [smem:[#allocation34_spill]]  ;;  %s2364_s21 = smov [#allocation14]  }
  0x48   : > { %s474_s16 = sshll.u32 %s2364_s21, 4  ;;  %s475_s16 = int_to_ptr.vmem [resolvable:$true] %s474_s16 }
  0x49   : > { %s2128_s3 = scalar_lea.vmem %s475_s16, 256  ;;  %p2136_p3 = scmp.lt.s32.totalorder %s475_s16, %s475_s16 }
  0x4a   : > { %p2129_p5 = scmp.ne.s32.totalorder %s475_s16, %s2128_s3  ;;  %p2137_p12 = scmp.lt.s32.totalorder %s2128_s3, %s2128_s3 }
  0x4c   : > { %p2131_p8 = pnand %p2129_p5, %p2560_p1  ;;  %p2138_p10 = por %p2137_p12, %p2136_p3 }
  0x4d   : > { %1905 = dma.hbm_to_vmem [thread:$0]  (!%p2554_p0), %s2896_s6, 256, %s451_s15, [#allocation12], %s2362_s29, %s2362_s29, %s2363_s20  }
  0x4e   : > { %p2132_p6 = pneg %p2131_p8 }
  0x50   : > { %p2139_p7 = pnand %p2138_p10, %p2132_p6 }
  0x52   : > { %2142 = shalt.err (!%p2139_p7)
}
  0x53   : > { %1911 = dma.hbm_to_vmem [thread:$0]  (!%p2554_p0), %s2853_s8, 256, %s475_s16, [#allocation15], %s2362_s29, %s2362_s29, %s2363_s20  }
  0x54   : > { %s2365_s26 = smov [#allocation5]   ;;  %s2366_s19 = smov [#allocation10]  }
  0x55   : > { %s415_s15 = sshll.u32 %s2365_s26, 4  ;;  %s440_s21 = sshll.u32 %s2366_s19, 4  ;;  %s416_s15 = int_to_ptr.vmem [resolvable:$true] %s415_s15  ;;  %s441_s21 = int_to_ptr.vmem [resolvable:$true] %s440_s21 }
  0x56   : > { %s2154_s6 = scalar_lea.vmem %s416_s15, 16  ;;  %s2161_s3 = scalar_lea.vmem %s416_s15, 32 }
  0x57   : > { %p2155_p9 = scmp.ne.s32.totalorder %s416_s15, %s2154_s6  ;;  %p2162_p2 = scmp.lt.s32.totalorder %s416_s15, %s416_s15 }
  0x58   : > { %p2163_p4 = scmp.lt.s32.totalorder %s2161_s3, %s2154_s6 }
  0x59   : > { %p2157_p11 = pnand %p2155_p9, %p2560_p1 }
  0x5a   : > { %p2164_p5 = por %p2163_p4, %p2162_p2 }
  0x5b   : > { %p2158_p13 = pneg %p2157_p11 }
  0x5d   : > { %p2165_p8 = pnand %p2164_p5, %p2158_p13 }
  0x5f   : > { %2168 = shalt.err (!%p2165_p8)
}
  0x60   : > { %1896 = dma.hbm_to_vmem [thread:$0]  (!%p2554_p0), %s2847_s2, 16, %s416_s15, [#allocation6]  }
  0x61   : > { %s2180_s20 = scalar_lea.vmem %s441_s21, 16  ;;  %s2187_s16 = scalar_lea.vmem %s441_s21, 32 }
  0x62   : > { %p2181_p6 = scmp.ne.s32.totalorder %s441_s21, %s2180_s20  ;;  %p2188_p10 = scmp.lt.s32.totalorder %s441_s21, %s441_s21 }
  0x63   : > { %p2189_p7 = scmp.lt.s32.totalorder %s2187_s16, %s2180_s20 }
  0x64   : > { %p2183_p3 = pnand %p2181_p6, %p2560_p1 }
  0x65   : > { %p2190_p9 = por %p2189_p7, %p2188_p10 }
  0x66   : > { %p2184_p12 = pneg %p2183_p3 }
  0x68   : > { %p2191_p11 = pnand %p2190_p9, %p2184_p12 }
  0x6a   : > { %2194 = shalt.err (!%p2191_p11)
}
  0x6b   : > { %1902 = dma.hbm_to_vmem [thread:$0]  (!%p2554_p0), %s2850_s5, 16, %s441_s21, [#allocation9]  }
  0x6c   : > { %s2367_s26 = smov [#allocation13]   ;;  %s2368_s19 = smov [#allocation16]  }
  0x6d   : > { %s464_s15 = sshll.u32 %s2367_s26, 4  ;;  %s488_s3 = sshll.u32 %s2368_s19, 4  ;;  %s465_s15 = int_to_ptr.vmem [resolvable:$true] %s464_s15  ;;  %s489_s3 = int_to_ptr.vmem [resolvable:$true] %s488_s3 }
  0x6e   : > { %s2206_s24 = scalar_lea.vmem %s465_s15, 16  ;;  %s2213_s29 = scalar_lea.vmem %s465_s15, 32 }
  0x6f   : > { %p2207_p13 = scmp.ne.s32.totalorder %s465_s15, %s2206_s24  ;;  %p2214_p5 = scmp.lt.s32.totalorder %s465_s15, %s465_s15 }
  0x70   : > { %p2215_p8 = scmp.lt.s32.totalorder %s2213_s29, %s2206_s24 }
  0x71   : > { %p2209_p2 = pnand %p2207_p13, %p2560_p1 }
  0x72   : > { %p2216_p6 = por %p2215_p8, %p2214_p5 }
  0x73   : > { %p2210_p4 = pneg %p2209_p2 }
  0x75   : > { %p2217_p3 = pnand %p2216_p6, %p2210_p4 }
  0x77   : > { %2220 = shalt.err (!%p2217_p3)
}
  0x78   : > { %1908 = dma.hbm_to_vmem [thread:$0]  (!%p2554_p0), %s2852_s7, 16, %s465_s15, [#allocation12]  }
  0x79   : > { %s2232_s16 = scalar_lea.vmem %s489_s3, 16  ;;  %s2239_s6 = scalar_lea.vmem %s489_s3, 32 }
  0x7a   : > { %p2233_p12 = scmp.ne.s32.totalorder %s489_s3, %s2232_s16  ;;  %p2240_p9 = scmp.lt.s32.totalorder %s489_s3, %s489_s3 }
  0x7b   : > { %p2241_p11 = scmp.lt.s32.totalorder %s2239_s6, %s2232_s16 }
  0x7c   : > { %p2235_p10 = pnand %p2233_p12, %p2560_p1 }
  0x7d   : > { %p2242_p13 = por %p2241_p11, %p2240_p9 }
  0x7e   : > { %p2236_p7 = pneg %p2235_p10 }
  0x80   : > { %p2243_p2 = pnand %p2242_p13, %p2236_p7 }
  0x82   : > { %2246 = shalt.err (!%p2243_p2)
}
  0x83   : > { %1914 = dma.hbm_to_vmem [thread:$0]  (!%p2554_p0), %s2854_s9, 16, %s489_s3, [#allocation15]  }
  0x84   : > { %p2897_p4 = scmp.ne.s32.totalorder %s2890_s18, 0 }
  0x85   : > { %p2898_p5 = scmp.ne.s32.totalorder (!%p2897_p4), %s2891_s10, 0 }
  0x86   : > { %527 = sbr.rel (%p2897_p4) target bundleno = 2450 (0x992), region = 80 }
  0x8b   : > { %2308 = dma.done.wait (%p2898_p5), [#allocation6], 16  }
  0x8c   : > { %2310 = vsyncadd (%p2898_p5), [#allocation6], 4294967280 }
  0x8d   : > { %2312 = dma.done.wait (%p2898_p5), [#allocation9], 32  }
  0x8e   : > { %2314 = vsyncadd (%p2898_p5), [#allocation9], 4294967264 }
  0x8f   : > { %2316 = dma.done.wait (%p2898_p5), [#allocation12], 272  }
  0x90   : > { %2318 = vsyncadd (%p2898_p5), [#allocation12], 4294967024 }
  0x91   : > { %2320 = dma.done.wait (%p2898_p5), [#allocation15], 272  }
  0x92   : > { %2322 = vsyncadd (%p2898_p5), [#allocation15], 4294967024  ;;  %p599_p0 = scmp.lt.s32.totalorder %s2345_s28, 1  ;;  %s1697_s23 = sshll.u32 %s2341_s27, 3  ;;  %vm613_vm0 = vcmask 261120   ;;  %v2021_v7 = vld [vmem:[%s2849_s4 + $0x8] sm:$0xff]   ;;  %v778_v51 = vlaneseq }
  0x93   : > { %v2369_v8 = vmov 0.0   ;;  %vm2370_vm1 = vmmov 0   ;;  %v2022_v9 = vld [vmem:[%s2849_s4] sm:$0xff]   ;;  %v1698_v14 = vld [vmem:[#allocation5] ss:$0 sm:$0xff]  ;;  %v2023_v19 = vld [vmem:[#allocation11 + $0x8] sm:$0xff]  }
  0x94   : > { %s600_s18 = scalar_select %p599_p0, %s2345_s28, 1  ;;  %1771 = vmatprep.subr.bf16.mxu1 %v2369_v8  ;;  %1775 = vmatprep.mubr.msk.bf16.mxu1 %vm2370_vm1, %v2369_v8  ;;  %v1699_v16 = vld [vmem:[#allocation8] ss:$0 sm:$0xff]  ;;  %v2024_v23 = vld [vmem:[#allocation11] sm:$0xff]   ;;  %v1700_v29 = vld [vmem:[#allocation10] ss:$0 sm:$0xff] }
  0x95   : > { %1772 = vmatpush3.bf16.msra.mxu1 %v2021_v7  ;;  %1787 = vmatprep.subr.bf16.mxu0 %v2369_v8  ;;  %v1704_v31 = vld [vmem:[#allocation13] ss:$0 sm:$0xff]  ;;  %vm784_vm2 = vcmask 64512   ;;  %s2371_s16 = smov 112   ;;  %s2372_s6 = smov 120   ;;  %v779_v52 = vand.u32 127, %v778_v51 }
  0x96   : > { %s1737_s0 = sshll.u32 %s600_s18, 4  ;;  %1773 = vmatprep.subr.bf16.mxu1 %v2369_v8  ;;  %1789 = vmatprep.mubr.msk.bf16.mxu0 %vm2370_vm1, %v2369_v8  ;;  %s2373_s17 = smov 104   ;;  %vm832_vm4 = vcmask 130048   ;;  %vm1007_vm5 = vcmask 130112   ;;  %vm1122_vm6 = vcmask 195712   ;;  %vm1237_vm7 = vcmask 261312  }
  0x97   : > { %s2637_s3 = scalar_lea.vmem %s2846_s1, %s1737_s0  ;;  %s605_s26 = sld [smem:[#allocation4 + %s2345_s28]]  ;;  %vm1470_vm9 = vcmask 523264  }
  0x98   : > { %s609_s24 = scalar_lea.vmem %s2637_s3, %s1697_s23  ;;  %v606_v21 = vld [vmem:[%s2637_s3] sm:$0xff]  ;;  %v607_v22 = vld [vmem:[%s2637_s3 + $0x8] sm:$0xff]  ;;  %s2374_s18 = smov 88  }
  0x99   : > { %v2640_v0 = vld [vmem:[%s609_s24] sm:$0xff]  ;;  %1774 = vmatpush3.bf16.msra.mxu1 %v2022_v9  ;;  %v710_v24 = vpack.c.bf16 %v607_v22, %v606_v21  ;;  %s2375_s23 = smov 96   ;;  %s2376_s0 = smov 72  }
  0x9a   : > { %v614_v1 = vsel %vm613_vm0, %v2640_v0, 0.0  ;;  %1779 = vmatprep.subr.bf16.mxu1 %v2369_v8  ;;  %s2377_s15 = smov 80   ;;  %s2378_s19 = smov 8  }
  0x9b   : > { %615 = vadd.xlane.f32.xlu0 %v614_v1  ;;  %s2379_s3 = smov 16   ;;  %s2380_s24 = smov 24  }
  0x9c   : > { %s2903_s29 = sld [smem:[#allocation37_spill]]  ;;  %p2905_p8 = scmp.ne.s32.totalorder %s2886_s22, 0 }
  0x9d   : > { %v780_v53 = vstv %s605_s26 }
  0x9e   : > { %vm2697_vm3 = vcmp.lt.s32.totalorder %v779_v52, %v780_v53 }
  0xa2   : > { %s2904_s21 = smov %s2903_s29 }
 0x124   : > { %v616_v2 = vpop.xlane.xlu0 %615 }
 0x125   : > { %v618_v3 = vmul.f32 0.03125, %v616_v2 }
 0x127   : > { %v619_v4 = vsub.f32 %v2640_v0, %v618_v3 }
 0x129   : > { %v620_v5 = vmul.f32 %v619_v4, %v619_v4 }
 0x12b   : > { %v621_v6 = vsel %vm613_vm0, %v620_v5, 0.0 }
 0x12c   : > { %622 = vadd.xlane.f32.xlu0 %v621_v6 }
 0x1b5   : > { %v623_v10 = vpop.xlane.xlu0 %622 }
 0x1b6   : > { %v624_v11 = vmul.f32 0.03125, %v623_v10 }
 0x1b8   : > { %v625_v12 = vadd.f32 1e-05, %v624_v11 }
 0x1ba   : > { %2033 = vrsqrt.f32 %v625_v12 }
 0x1c7   : > { %v2034_v13 = vpop.eup %2033 }
 0x1c8   : > { %v627_v15 = vmul.f32 %v2034_v13, %v619_v4 }
 0x1ca   : > { %v634_v17 = vmul.f32 %v1698_v14, %v627_v15 }
 0x1cc   : > { %v641_v18 = vadd.f32 %v1699_v16, %v634_v17 }
 0x1ce   : > { %v642_v20 = vpack.c.bf16 %v641_v18, %v641_v18 }
 0x1d0   : > { %1776 = vmatmul.mubr.msk.bf16.vlgmr.msra.gmra.mxu1 %vm613_vm0, %v642_v20 }
 0x1d1   : > { %1780 = vmatpush3.bf16.msra.mxu1 %v2023_v19  ;;  %1783 = vmatprep.mubr.msk.bf16.mxu1 %vm2370_vm1, %v2369_v8 }
 0x1d2   : > { %1781 = vmatprep.subr.bf16.mxu1 %v2369_v8 }
 0x1d5   : > { %1782 = vmatpush3.bf16.msra.mxu1 %v2024_v23 }
 0x1d6   : > { %1793 = vmatprep.subr.bf16.mxu1 %v2369_v8 }
 0x1d8   : > { %1784 = vmatmul.mubr.msk.bf16.vlgmr.msra.gmra.mxu1 %vm613_vm0, %v710_v24 }
 0x1d9   : > { %1795 = vmatprep.mubr.msk.bf16.mxu1 %vm2370_vm1, %v2369_v8 }
 0x290   : > { %v703_v25 = vpop.f32.mrf.mxu1 }
 0x291   : > { %v704_v33 = vadd.f32 %v1700_v29, %v703_v25 }
 0x292   : > { %v1777_v26 = vpop.f32.mrf.mxu1 }
 0x293   : > { %v709_v38 = vmul.f32 0.35355338, %v704_v33 }
 0x294   : > { %v706_v27 = vpop.f32.mrf.mxu1 }
 0x295   : > { %v782_v41 = vpack.c.bf16 %v709_v38, %v709_v38 }
 0x296   : > { %v1778_v28 = vpop.f32.mrf.mxu1 }
 0x298   : > { %v771_v30 = vpop.f32.mrf.mxu1 }
 0x299   : > { %v772_v35 = vadd.f32 %v1704_v31, %v771_v30 }
 0x29a   : > { %v1785_v32 = vpop.f32.mrf.mxu1 }
 0x29c   : > { %v774_v34 = vpop.f32.mrf.mxu1 }
 0x29d   : > { %v775_v36 = vadd.f32 %v1704_v31, %v774_v34 }
 0x29e   : > { %v1786_v37 = vpop.f32.mrf.mxu1 }
 0x29f   : > { %v2670_v39 = vpack.c.bf16 %v775_v36, %v772_v35 }
 0x2a1   : > { %1011 = vrot.lane.b32.xlu0 %v2670_v39, %s2371_s16  ;;  %896 = vrot.lane.b32.xlu1 %v2670_v39, %s2372_s6  ;;  %v789_v40 = vsel %vm784_vm2, %v2670_v39, 0 }
 0x2a2   : > { %1788 = vmatpush3.bf16.xpose.msra.mxu0 %v789_v40 }
 0x2a3   : > { %1799 = vmatprep.subr.bf16.mxu0 %v2369_v8 }
 0x2a5   : > { %894 = vrot.lane.b32.xlu1 %v782_v41, %s2372_s6 }
 0x2a9   : > { %1009 = vrot.lane.b32.xlu1 %v782_v41, %s2371_s16  ;;  %1790 = vmatmul.mubr.msk.bf16.vlgmr.msra.gmra.mxu0 %vm784_vm2, %v782_v41  ;;  %s596_s16 = sand.u32 1, %s2333_s25  }
 0x2aa   : > { %1801 = vmatprep.mubr.msk.bf16.mxu0 %vm2370_vm1, %v2369_v8  ;;  %s1694_s6 = sshll.u32 %s596_s16, 3 }
 0x2ad   : > { %1126 = vrot.lane.b32.xlu1 %v2670_v39, %s2373_s17 }
 0x2b1   : > { %1124 = vrot.lane.b32.xlu1 %v782_v41, %s2373_s17  ;;  %s2901_s17 = sld [smem:[#allocation35_spill]] }
 0x313   : > { %v897_v42 = vpop.permute.xlu1 %896  ;;  %v1012_v45 = vpop.permute.xlu0 %1011 }
 0x314   : > { %v902_v43 = vsel %vm784_vm2, %v897_v42, 0  ;;  %v1017_v47 = vsel %vm784_vm2, %v1012_v45, 0 }
 0x315   : > { %1800 = vmatpush3.bf16.xpose.msra.mxu0 %v902_v43 }
 0x316   : > { %1811 = vmatprep.subr.bf16.mxu0 %v2369_v8 }
 0x317   : > { %v895_v44 = vpop.permute.xlu1 %894 }
 0x31b   : > { %v1010_v46 = vpop.permute.xlu1 %1009 }
 0x31c   : > { %1802 = vmatmul.mubr.msk.bf16.vlgmr.msra.gmra.mxu0 %vm784_vm2, %v895_v44 }
 0x31d   : > { %1812 = vmatpush3.bf16.xpose.msra.mxu0 %v1017_v47  ;;  %1813 = vmatprep.mubr.msk.bf16.mxu0 %vm2370_vm1, %v2369_v8 }
 0x31e   : > { %1823 = vmatprep.subr.bf16.mxu0 %v2369_v8 }
 0x31f   : > { %v1127_v48 = vpop.permute.xlu1 %1126 }
 0x320   : > { %v1132_v49 = vsel %vm784_vm2, %v1127_v48, 0 }
 0x323   : > { %v1125_v50 = vpop.permute.xlu1 %1124 }
 0x324   : > { %1814 = vmatmul.mubr.msk.bf16.vlgmr.msra.gmra.mxu0 %vm784_vm2, %v1010_v46 }
 0x325   : > { %1824 = vmatpush3.bf16.xpose.msra.mxu0 %v1132_v49  ;;  %1825 = vmatprep.mubr.msk.bf16.mxu0 %vm2370_vm1, %v2369_v8 }
 0x326   : > { %1835 = vmatprep.subr.bf16.mxu0 %v2369_v8 }
 0x32c   : > { %1826 = vmatmul.mubr.msk.bf16.vlgmr.msra.gmra.mxu0 %vm784_vm2, %v1125_v50 }
 0x32d   : > { %1839 = vmatprep.mubr.msk.bf16.mxu0 %vm2370_vm1, %v2369_v8 }
 0x369   : > { %v825_v55 = vpop.f32.mrf.mxu0 }
 0x36a   : > { %v831_v56 = vsel %vm2697_vm3, %v825_v55, -1e+30 }
 0x36b   : > { %v1791_v57 = vpop.f32.mrf.mxu0  ;;  %v833_v58 = vsel %vm832_vm4, %v831_v56, -inf }
 0x36c   : > { %834 = vmax.xlane.f32.xlu1 %v833_v58 }
 0x36d   : > { %v828_v59 = vpop.f32.mrf.mxu0 }
 0x36f   : > { %v1792_v60 = vpop.f32.mrf.mxu0 }
 0x37d   : > { %955 = vrot.lane.b32.xlu1 %v2670_v39, %s2374_s18 }
 0x3dc   : > { %v938_v61 = vpop.f32.mrf.mxu0 }
 0x3dd   : > { %v944_v62 = vsel %vm2697_vm3, %v938_v61, -1e+30  ;;  %v2025_v61 = vld [vmem:[#allocation14 + $0x8] sm:$0xff]  }
 0x3de   : > { %v1803_v63 = vpop.f32.mrf.mxu0  ;;  %v945_v1 = vsel %vm832_vm4, %v944_v62, -inf  ;;  %1836 = vmatpush3.bf16.msra.mxu0 %v2025_v61 }
 0x3df   : > { %946 = vmax.xlane.f32.xlu0 %v945_v1  ;;  %v2026_v1 = vld [vmem:[#allocation14] sm:$0xff]   ;;  %1837 = vmatprep.subr.bf16.mxu0 %v2369_v8 }
 0x3e0   : > { %v941_v2 = vpop.f32.mrf.mxu0 }
 0x3e2   : > { %v1804_v3 = vpop.f32.mrf.mxu0  ;;  %1838 = vmatpush3.bf16.msra.mxu0 %v2026_v1 }
 0x3e3   : > { %1851 = vmatprep.subr.bf16.mxu0 %v2369_v8 }
 0x3e4   : > { %v1053_v4 = vpop.f32.mrf.mxu0 }
 0x3e5   : > { %v1059_v5 = vsel %vm2697_vm3, %v1053_v4, -1e+30 }
 0x3e6   : > { %v1815_v6 = vpop.f32.mrf.mxu0  ;;  %v1060_v7 = vsel %vm832_vm4, %v1059_v5, -inf }
 0x3e7   : > { %1061 = vmax.xlane.f32.xlu1 %v1060_v7 }
 0x3e8   : > { %v1056_v9 = vpop.f32.mrf.mxu0 }
 0x3ea   : > { %v1816_v10 = vpop.f32.mrf.mxu0 }
 0x3ec   : > { %v1168_v11 = vpop.f32.mrf.mxu0 }
 0x3ed   : > { %v1174_v12 = vsel %vm2697_vm3, %v1168_v11, -1e+30 }
 0x3ee   : > { %v1827_v13 = vpop.f32.mrf.mxu0  ;;  %v1175_v14 = vsel %vm832_vm4, %v1174_v12, -inf }
 0x3ef   : > { %1176 = vmax.xlane.f32.xlu1 %v1175_v14 }
 0x3f0   : > { %v1171_v15 = vpop.f32.mrf.mxu0 }
 0x3f2   : > { %v1828_v16 = vpop.f32.mrf.mxu0 }
 0x3f5   : > { %844 = vrot.lane.b32.xlu0 %v2670_v39, %s2375_s23  ;;  %v835_v17 = vpop.xlane.xlu1 %834 }
 0x3f6   : > { %v836_v18 = vsub.f32 %v831_v56, %v835_v17 }
 0x3f8   : > { %v837_v19 = vmul.f32 1.442695, %v836_v18  ;;  %v1716_v18 = vld [vmem:[#allocation16] ss:$0 sm:$0xff] }
 0x3f9   : > { %1185 = vrot.lane.b32.xlu0 %v2670_v39, %s2376_s0  ;;  %v956_v24 = vpop.permute.xlu1 %955  ;;  %s2902_s0 = sld [smem:[#allocation36_spill]] }
 0x3fa   : > { %2035 = vpow2.f32 %v837_v19 }
 0x400   : > { %1070 = vrot.lane.b32.xlu1 %v2670_v39, %s2377_s15 }
 0x407   : > { %v2036_v22 = vpop.eup %2035 }
 0x408   : > { %v842_v26 = vpack.c.bf16 %v2036_v22, %v2036_v22  ;;  %v839_v37 = vsel %vm832_vm4, %v2036_v22, 0.0 }
 0x468   : > { %v947_v20 = vpop.xlane.xlu0 %946 }
 0x469   : > { %v948_v21 = vsub.f32 %v944_v62, %v947_v20 }
 0x46b   : > { %v949_v23 = vmul.f32 1.442695, %v948_v21 }
 0x46c   : > { %v845_v25 = vpop.permute.xlu0 %844 }
 0x46d   : > { %2037 = vpow2.f32 %v949_v23  ;;  %1794 = vmatpush3.bf16.msra.mxu1 %v845_v25 }
 0x46e   : > { %1805 = vmatprep.subr.bf16.mxu1 %v2369_v8 }
 0x470   : > { %1796 = vmatmul.mubr.msk.bf16.vlgmr.msra.gmra.mxu1 %vm832_vm4, %v842_v26  ;;  %v1062_v27 = vpop.xlane.xlu1 %1061  ;;  %v1186_v41 = vpop.permute.xlu0 %1185 }
 0x471   : > { %v1063_v28 = vsub.f32 %v1059_v5, %v1062_v27  ;;  %1806 = vmatpush3.bf16.msra.mxu1 %v956_v24  ;;  %1807 = vmatprep.mubr.msk.bf16.mxu1 %vm2370_vm1, %v2369_v8 }
 0x472   : > { %1817 = vmatprep.subr.bf16.mxu1 %v2369_v8 }
 0x473   : > { %v1064_v29 = vmul.f32 1.442695, %v1063_v28 }
 0x475   : > { %2039 = vpow2.f32 %v1064_v29 }
 0x478   : > { %v1177_v30 = vpop.xlane.xlu1 %1176 }
 0x479   : > { %v1178_v31 = vsub.f32 %v1174_v12, %v1177_v30 }
 0x47a   : > { %v2038_v32 = vpop.eup %2037 }
 0x47b   : > { %v1179_v33 = vmul.f32 1.442695, %v1178_v31  ;;  %v951_v34 = vsel %vm832_vm4, %v2038_v32, 0.0  ;;  %v954_v35 = vpack.c.bf16 %v2038_v32, %v2038_v32  ;;  %v2027_v31 = vld [vmem:[%s2857_s12 + $0x8] sm:$0xff]  }
 0x47c   : > { %952 = vadd.xlane.f32.xlu1 %v951_v34  ;;  %v1071_v36 = vpop.permute.xlu1 %1070 }
 0x47d   : > { %2041 = vpow2.f32 %v1179_v33  ;;  %1808 = vmatmul.mubr.msk.bf16.vlgmr.msra.gmra.mxu1 %vm832_vm4, %v954_v35 }
 0x47e   : > { %1818 = vmatpush3.bf16.msra.mxu1 %v1071_v36  ;;  %1819 = vmatprep.mubr.msk.bf16.mxu1 %vm2370_vm1, %v2369_v8  ;;  %v1720_v36 = vld [vmem:[%s2901_s17] ss:$0 sm:$0xff]  ;;  %s1733_s17 = sshll.u32 %s2345_s28, 1 }
 0x47f   : > { %1829 = vmatprep.subr.bf16.mxu1 %v2369_v8  ;;  %s1528_s26 = sadd.s32 %s2341_s27, %s1733_s17  ;;  %s1517_s27 = scalar_lea.sflag [#allocation7], %s596_s16 }
 0x480   : > { %840 = vadd.xlane.f32.xlu1 %v839_v37  ;;  %s1734_s15 = sshll.u32 %s1528_s26, 7 }
 0x481   : > { %s2792_s20 = scalar_lea.hbm %s2903_s29, %s1734_s15 }
 0x482   : > { %v2040_v38 = vpop.eup %2039 }
 0x483   : > { %v1066_v39 = vsel %vm832_vm4, %v2040_v38, 0.0  ;;  %v1069_v40 = vpack.c.bf16 %v2040_v38, %v2040_v38  ;;  %v1721_v38 = vld [vmem:[%s2856_s11] ss:$0 sm:$0xff] }
 0x484   : > { %1067 = vadd.xlane.f32.xlu0 %v1066_v39 }
 0x485   : > { %1820 = vmatmul.mubr.msk.bf16.vlgmr.msra.gmra.mxu1 %vm832_vm4, %v1069_v40 }
 0x486   : > { %1830 = vmatpush3.bf16.msra.mxu1 %v1186_v41  ;;  %1831 = vmatprep.mubr.msk.bf16.mxu1 %vm2370_vm1, %v2369_v8 }
 0x487   : > { %1843 = vmatprep.subr.bf16.mxu1 %v2369_v8 }
 0x48a   : > { %v2042_v42 = vpop.eup %2041 }
 0x48b   : > { %v1181_v43 = vsel %vm832_vm4, %v2042_v42, 0.0  ;;  %v1184_v44 = vpack.c.bf16 %v2042_v42, %v2042_v42  ;;  %v2029_v42 = vld [vmem:[%s2859_s14 + $0x18] sm:$0xff]  }
 0x48c   : > { %1182 = vadd.xlane.f32.xlu0 %v1181_v43  ;;  %v2030_v43 = vld [vmem:[%s2859_s14 + $0x10] sm:$0xff]  }
 0x48d   : > { %1832 = vmatmul.mubr.msk.bf16.vlgmr.msra.gmra.mxu1 %vm832_vm4, %v1184_v44  ;;  %v2031_v44 = vld [vmem:[%s2859_s14 + $0x8] sm:$0xff]  }
 0x48e   : > { %1847 = vmatprep.mubr.msk.bf16.mxu1 %vm2370_vm1, %v2369_v8  ;;  %1844 = vmatpush3.bf16.msra.mxu1 %v2027_v31 }
 0x48f   : > { %1845 = vmatprep.subr.bf16.mxu1 %v2369_v8 }
 0x505   : > { %v953_v45 = vpop.xlane.xlu1 %952 }
 0x509   : > { %v841_v46 = vpop.xlane.xlu1 %840 }
 0x50a   : > { %2043 = vrcp.f32 %v841_v46  ;;  %v1722_v46 = vld [vmem:[%s2858_s13] ss:$0 sm:$0xff] }
 0x50b   : > { %2045 = vrcp.f32 %v953_v45  ;;  %v2032_v45 = vld [vmem:[%s2859_s14] sm:$0xff]  }
 0x50d   : > { %v1068_v52 = vpop.xlane.xlu0 %1067 }
 0x50e   : > { %2047 = vrcp.f32 %v1068_v52 }
 0x515   : > { %v1183_v55 = vpop.xlane.xlu0 %1182 }
 0x516   : > { %2049 = vrcp.f32 %v1183_v55 }
 0x517   : > { %v2044_v47 = vpop.eup %2043 }
 0x518   : > { %v2046_v54 = vpop.eup %2045 }
 0x51b   : > { %v2048_v62 = vpop.eup %2047 }
 0x523   : > { %v2050_v6 = vpop.eup %2049 }
 0x530   : > { %v884_v48 = vpop.f32.mrf.mxu1 }
 0x531   : > { %v891_v49 = vmul.f32 %v2044_v47, %v884_v48 }
 0x532   : > { %v1797_v50 = vpop.f32.mrf.mxu1 }
 0x533   : > { %892 = vst.msk [vmem:[#allocation2] sm:$0xff] %vm784_vm2, %v891_v49 }
 0x534   : > { %v887_v51 = vpop.f32.mrf.mxu1 }
 0x536   : > { %v1798_v53 = vpop.f32.mrf.mxu1 }
 0x53d   : > { %v995_v56 = vpop.f32.mrf.mxu1 }
 0x53e   : > { %v1002_v57 = vmul.f32 %v2046_v54, %v995_v56 }
 0x53f   : > { %v1809_v58 = vpop.f32.mrf.mxu1 }
 0x540   : > { %1004 = vrot.lane.b32.xlu0 %v1002_v57, %s2378_s19  ;;  %s598_s19 = scalar_lea.vmem [#allocation17], %s1694_s6  ;;  %s2382_s6 = smov [#allocation17]  }
 0x541   : > { %v998_v59 = vpop.f32.mrf.mxu1  ;;  %s2251_s17 = sshll.u32 %s2382_s6, 4  ;;  %s2252_s17 = int_to_ptr.vmem [resolvable:$false] %s2251_s17 }
 0x542   : > { %s2253_s26 = scalar_lea.vmem %s2252_s17, 256 }
 0x543   : > { %v1810_v60 = vpop.f32.mrf.mxu1 }
 0x545   : > { %v1110_v63 = vpop.f32.mrf.mxu1 }
 0x546   : > { %v1117_v2 = vmul.f32 %v2048_v62, %v1110_v63 }
 0x547   : > { %v1821_v3 = vpop.f32.mrf.mxu1 }
 0x548   : > { %1119 = vrot.lane.b32.xlu1 %v1117_v2, %s2379_s3  ;;  %s1532_s3 = sshll.u32 %s598_s19, 4  ;;  %s2794_s3 = int_to_ptr.vmem [resolvable:$true] %s1532_s3 }
 0x549   : > { %v1113_v4 = vpop.f32.mrf.mxu1  ;;  %s2247_s28 = scalar_lea.vmem %s2794_s3, 128  ;;  %p2254_p12 = scmp.lt.s32.totalorder %s2794_s3, %s2252_s17 }
 0x54a   : > { %p2248_p1 = scmp.ne.s32.totalorder %s2794_s3, %s2247_s28  ;;  %p2255_p10 = scmp.lt.s32.totalorder %s2253_s26, %s2247_s28 }
 0x54b   : > { %v1822_v5 = vpop.f32.mrf.mxu1 }
 0x54c   : > { %p2249_p6 = pnand %p2248_p1, %p2905_p8  ;;  %p2256_p7 = por %p2255_p10, %p2254_p12 }
 0x54d   : > { %v1225_v7 = vpop.f32.mrf.mxu1 }
 0x54e   : > { %v1232_v9 = vmul.f32 %v2050_v6, %v1225_v7  ;;  %p2250_p3 = pneg %p2249_p6 }
 0x54f   : > { %v1833_v10 = vpop.f32.mrf.mxu1 }
 0x550   : > { %1234 = vrot.lane.b32.xlu1 %v1232_v9, %s2380_s24  ;;  %v2381_v9 = vmov -1.0   ;;  %p2257_p9 = pnand %p2256_p7, %p2250_p3 }
 0x551   : > { %v1228_v11 = vpop.f32.mrf.mxu1 }
 0x553   : > { %v1834_v12 = vpop.f32.mrf.mxu1 }
 0x5b2   : > { %v1005_v13 = vpop.permute.xlu0 %1004 }
 0x5b3   : > { %1008 = vst.msk [vmem:[#allocation2] sm:$0xff] %vm1007_vm5, %v1005_v13 }
 0x5ba   : > { %v1120_v14 = vpop.permute.xlu1 %1119 }
 0x5bb   : > { %1123 = vst.msk [vmem:[#allocation2] sm:$0xff] %vm1122_vm6, %v1120_v14 }
 0x5c2   : > { %v1235_v15 = vpop.permute.xlu1 %1234 }
 0x5c3   : > { %1238 = vst.msk [vmem:[#allocation2] sm:$0xff] %vm1237_vm7, %v1235_v15 }
 0x5ca   : > { %v1239_v16 = vld [vmem:[#allocation2] sm:$0xff] }
 0x5cb   : > { %v1240_v17 = vpack.c.bf16 %v1239_v16, %v1239_v16  ;;  %v1726_v16 = vld [vmem:[%s2902_s0] ss:$0 sm:$0xff] }
 0x5cd   : > { %1840 = vmatmul.mubr.msk.bf16.vlgmr.msra.gmra.mxu0 %vm613_vm0, %v1240_v17 }
 0x5ce   : > { %1859 = vmatprep.mubr.msk.bf16.mxu0 %vm2370_vm1, %v2369_v8  ;;  %1852 = vmatpush3.bf16.msra.mxu0 %v2029_v42 }
 0x5cf   : > { %1853 = vmatprep.subr.bf16.mxu0 %v2369_v8 }
 0x5d2   : > { %1854 = vmatpush3.bf16.msra.mxu0 %v2030_v43 }
 0x5d3   : > { %1855 = vmatprep.subr.bf16.mxu0 %v2369_v8 }
 0x5d6   : > { %1856 = vmatpush3.bf16.msra.mxu0 %v2031_v44 }
 0x5d7   : > { %1857 = vmatprep.subr.bf16.mxu0 %v2369_v8 }
 0x5da   : > { %1858 = vmatpush3.bf16.msra.mxu0 %v2032_v45 }
 0x68d   : > { %v1301_v19 = vpop.f32.mrf.mxu0 }
 0x68e   : > { %v1302_v20 = vadd.f32 %v1716_v18, %v1301_v19 }
 0x68f   : > { %v1841_v21 = vpop.f32.mrf.mxu0 }
 0x690   : > { %v2744_v22 = vadd.f32 %v1302_v20, %v2640_v0  ;;  %v2028_v0 = vld [vmem:[%s2857_s12] sm:$0xff]  }
 0x691   : > { %v1304_v23 = vpop.f32.mrf.mxu0  ;;  %1846 = vmatpush3.bf16.msra.mxu1 %v2028_v0 }
 0x692   : > { %v1310_v24 = vsel %vm613_vm0, %v2744_v22, 0.0 }
 0x693   : > { %1311 = vadd.xlane.f32.xlu0 %v1310_v24  ;;  %v1842_v25 = vpop.f32.mrf.mxu0 }
 0x71c   : > { %v1312_v26 = vpop.xlane.xlu0 %1311 }
 0x71d   : > { %v1313_v27 = vmul.f32 0.03125, %v1312_v26 }
 0x71f   : > { %v1314_v28 = vsub.f32 %v2744_v22, %v1313_v27 }
 0x721   : > { %v1315_v29 = vmul.f32 %v1314_v28, %v1314_v28 }
 0x723   : > { %v1316_v30 = vsel %vm613_vm0, %v1315_v29, 0.0 }
 0x724   : > { %1317 = vadd.xlane.f32.xlu1 %v1316_v30 }
 0x7ad   : > { %v1318_v32 = vpop.xlane.xlu1 %1317 }
 0x7ae   : > { %v1319_v33 = vmul.f32 0.03125, %v1318_v32 }
 0x7b0   : > { %v1320_v34 = vadd.f32 1e-05, %v1319_v33 }
 0x7b2   : > { %2051 = vrsqrt.f32 %v1320_v34 }
 0x7bf   : > { %v2052_v35 = vpop.eup %2051 }
 0x7c0   : > { %v1322_v37 = vmul.f32 %v2052_v35, %v1314_v28 }
 0x7c2   : > { %v1329_v39 = vmul.f32 %v1720_v36, %v1322_v37 }
 0x7c4   : > { %v1336_v40 = vadd.f32 %v1721_v38, %v1329_v39 }
 0x7c6   : > { %v1337_v41 = vpack.c.bf16 %v1336_v40, %v1336_v40 }
 0x7c8   : > { %1848 = vmatmul.mubr.msk.bf16.vlgmr.msra.gmra.mxu1 %vm613_vm0, %v1337_v41 }
 0x888   : > { %v1398_v47 = vpop.f32.mrf.mxu1 }
 0x889   : > { %v1399_v48 = vadd.f32 %v1722_v46, %v1398_v47 }
 0x88a   : > { %v1849_v49 = vpop.f32.mrf.mxu1 }
 0x88b   : > { %v1405_v50 = vmul.f32 0.70710677, %v1399_v48  ;;  %v1404_v12 = vmul.f32 0.5, %v1399_v48 }
 0x88c   : > { %v1401_v51 = vpop.f32.mrf.mxu1 }
 0x88d   : > { %v1408_v52 = vand.u32 2147483647, %v1405_v50  ;;  %vm1406_vm8 = vcmp.ge.f32.partialorder %v1405_v50, 0.0 }
 0x88e   : > { %v1850_v53 = vpop.f32.mrf.mxu1  ;;  %v1407_v10 = vsel %vm1406_vm8, 1.0, %v2381_v9 }
 0x88f   : > { %v1409_v54 = vmul.f32 0.3275911, %v1408_v52  ;;  %v1421_v8 = vsub.f32 0.0, %v1408_v52 }
 0x891   : > { %v1410_v55 = vadd.f32 1.0, %v1409_v54  ;;  %v1422_v56 = vmul.f32 %v1421_v8, %v1408_v52 }
 0x893   : > { %2053 = vrcp.f32 %v1410_v55  ;;  %v1423_v59 = vmul.f32 1.442695, %v1422_v56 }
 0x895   : > { %2055 = vpow2.f32 %v1423_v59 }
 0x8a0   : > { %v2054_v57 = vpop.eup %2053 }
 0x8a1   : > { %v1412_v58 = vmul.f32 1.0614054, %v2054_v57 }
 0x8a2   : > { %v2056_v5 = vpop.eup %2055 }
 0x8a3   : > { %v1413_v60 = vadd.f32 -1.4531521, %v1412_v58 }
 0x8a5   : > { %v1414_v61 = vmul.f32 %v2054_v57, %v1413_v60 }
 0x8a7   : > { %v1415_v62 = vadd.f32 1.4214138, %v1414_v61 }
 0x8a9   : > { %v1416_v63 = vmul.f32 %v2054_v57, %v1415_v62 }
 0x8ab   : > { %v1417_v1 = vadd.f32 -0.28449672, %v1416_v63 }
 0x8ad   : > { %v1418_v2 = vmul.f32 %v2054_v57, %v1417_v1 }
 0x8af   : > { %v1419_v3 = vadd.f32 0.2548296, %v1418_v2 }
 0x8b1   : > { %v1420_v4 = vmul.f32 %v2054_v57, %v1419_v3 }
 0x8b3   : > { %v1425_v6 = vmul.f32 %v2056_v5, %v1420_v4 }
 0x8b5   : > { %v1426_v7 = vsub.f32 1.0, %v1425_v6 }
 0x8b7   : > { %v1427_v11 = vmul.f32 %v1426_v7, %v1407_v10 }
 0x8b9   : > { %v1428_v13 = vadd.f32 1.0, %v1427_v11 }
 0x8bb   : > { %v1429_v14 = vmul.f32 %v1428_v13, %v1404_v12 }
 0x8bd   : > { %v1430_v15 = vpack.c.bf16 %v1429_v14, %v1429_v14 }
 0x8bf   : > { %1860 = vmatmul.mubr.msk.bf16.vlgmr.msra.gmra.mxu0 %vm1470_vm9, %v1430_v15 }
 0x97f   : > { %v1508_v17 = vpop.f32.mrf.mxu0 }
 0x980   : > { %v1509_v18 = vadd.f32 %v1726_v16, %v1508_v17 }
 0x981   : > { %v1861_v19 = vpop.f32.mrf.mxu0 }
 0x982   : > { %v1514_v20 = vadd.f32 %v1509_v18, %v2744_v22 }
 0x983   : > { %v1511_v21 = vpop.f32.mrf.mxu0 }
 0x984   : > { %1515 = vst.msk [vmem:[%s598_s19] sm:$0xff] %vm613_vm0, %v1514_v20 }
 0x985   : > { %v1862_v23 = vpop.f32.mrf.mxu0 }
 0x986   : > { %2260 = shalt.err (!%p2257_p9)
}
 0x987   : > { %s2261_s18 = scalar_lea.hbm %s2792_s20, 128  ;;  %s2265_s0 = scalar_lea.hbm %s2904_s21, 512 }
 0x988   : > { %p2262_p11 = scmp.ne.s32.totalorder %s2792_s20, %s2261_s18  ;;  %p2266_p4 = scmp.lt.s32.totalorder %s2792_s20, %s2904_s21 }
 0x989   : > { %p2267_p5 = scmp.lt.s32.totalorder %s2265_s0, %s2261_s18 }
 0x98a   : > { %p2263_p13 = pnand %p2262_p11, %p2905_p8 }
 0x98b   : > { %p2268_p0 = por %p2267_p5, %p2266_p4 }
 0x98c   : > { %p2264_p2 = pneg %p2263_p13 }
 0x98e   : > { %p2269_p1 = pnand %p2268_p0, %p2264_p2 }
 0x990   : > { %2272 = shalt.err (!%p2269_p1)
}
 0x991   : > { %1891 = dma.vmem_to_hbm [thread:$0]  (%p2905_p8), %s2794_s3, 128, %s2792_s20, %s1517_s27  }
 0x992 PF: > { %s2906_s24 = sld [smem:[#allocation24_spill]]  ;;  %p1933_p6 = scmp.ge.s32.totalorder %s2357_s30, 2 }
 0x993   : > { %s2907_s10 = sld [smem:[#allocation30_spill]] }
 0x998   : > { %s1544_s29 = sand.u32 1, %s2906_s24  }
 0x999   : > { %p2908_p3 = scmp.ne.s32.totalorder %s2907_s10, 0  ;;  %s1545_s28 = scalar_lea.sflag [#allocation7], %s1544_s29 }
 0x99b   : > { %p1916_p12 = pnand %p1933_p6, %p2908_p3 }
 0x99d   : > { %p1917_p10 = pneg %p1916_p12 }
 0x99f   : > { %2324 = dma.done.wait (%p1917_p10), %s1545_s28, 128  }
 0x9a0   : > { %2326 = vsyncadd (%p1917_p10), %s1545_s28, 4294967168  ;;  %s37_s30 = sadd.s32 1, %s2357_s30   ;;  %s2909_s22 = sld [smem:[#allocation25_spill]] }
 0x9a1   : > { %p34_p7 = scmp.ge.s32.totalorder %s37_s30, 6   ;;  %s2910_s26 = sld [smem:[#allocation31_spill]] }
 0x9a2   : > { %s2911_s27 = sld [smem:[#allocation26_spill]]  ;;  %s2915_s24 = smov %s2333_s25 }
 0x9a3   : > { %s2912_s28 = sld [smem:[#allocation27_spill]]  ;;  %36 = sbr.rel (!%p34_p7) target bundleno = 26 (0x1a), region = 145 }
 0x9a4   : > { %s2913_s10 = sld [smem:[#allocation28_spill]] }
 0x9a5   : > { %s2914_s29 = sld [smem:[#allocation29_spill]] }
 0x9a6   : > { %s2916_s25 = smov %s2909_s22 }
 0x9a8   :  { %1550 = vsyncpa [#allocation6], 1 }
 0x9a9   :  { %1552 = vsyncpa [#allocation6 + $0x1], 1 }
 0x9aa   :  { %1553 = vsyncpa [#allocation9], 1 }
 0x9ab   :  { %1554 = vsyncpa [#allocation12], 1 }
 0x9ac   :  { %1555 = vsyncpa [#allocation15], 1 }
 0x9ad   :  { %1556 = vsyncpa [#allocation7], 1 }
 0x9ae   :  { %1558 = vsyncpa [#allocation7 + $0x1], 1 }

</bundles_post_ra>
